<compile_context>
chip_gen: v7x
topology: tpu7x:2x2x1
jax: 0.10.0
libtpu: 0.0.40
codegen_flags: <defaults>
</compile_context>

<pallas_src>
import functools

import jax
import jax.numpy as jnp
from jax.experimental import pallas as pl
from jax.experimental.pallas import tpu as pltpu


def _round_up(x, m):
    return (x + m - 1) // m * m


# ---------------------------------------------------------------------------
# Kernel 1: streamed factorized projection + online row-softmax + embedding mix
#   out = softmax(A1 @ A2, axis=-1) @ W
# grid = (rows_p / tm, orig_p / tn); A2 streamed as (fac, tn), W as (tn, emb_p).
# Row tiles beyond the scalar-prefetched active-block count are skipped
# (no compute, no new input DMAs).
# ---------------------------------------------------------------------------
def _factorized_softmax_kernel(nblk_ref, a1_ref, a2_ref, w_ref, out_ref,
                               m_ref, l_ref, acc_ref,
                               *, valid_cols, needs_mask, approx):
    i = pl.program_id(0)
    j = pl.program_id(1)
    last_j = pl.num_programs(1) - 1

    @pl.when(i < nblk_ref[0])          # skip compute for inactive row tiles
    def _():
        @pl.when(j == 0)
        def _():
            m_ref[...] = jnp.full_like(m_ref, -jnp.inf)
            l_ref[...] = jnp.zeros_like(l_ref)
            acc_ref[...] = jnp.zeros_like(acc_ref)

        logits = jnp.dot(a1_ref[...], a2_ref[...],
                         preferred_element_type=jnp.float32)         # (tm, tn) f32

        def update(lg):
            m_prev = m_ref[...]
            m_new = jnp.maximum(m_prev, jnp.max(lg, axis=-1, keepdims=True))
            alpha = jnp.exp(m_prev - m_new)
            p = jnp.exp(lg - m_new)                                   # unnormalized
            l_ref[...] = alpha * l_ref[...] + jnp.sum(p, axis=-1, keepdims=True)
            acc_ref[...] = alpha * acc_ref[...] + jnp.dot(
                p.astype(w_ref.dtype), w_ref[...],
                preferred_element_type=jnp.float32)
            m_ref[...] = m_new

        if needs_mask:
            # Only the last reduction tile has padded columns -> only mask there.
            tn = logits.shape[1]

            @pl.when(j == last_j)
            def _():
                col = j * tn + jax.lax.broadcasted_iota(jnp.int32, logits.shape, 1)
                update(jnp.where(col < valid_cols, logits, -jnp.inf))

            @pl.when(j != last_j)
            def _():
                update(logits)
        else:
            update(logits)

        @pl.when(j == last_j)
        def _():
            if approx:
                inv_l = pl.reciprocal(l_ref[...], approx=True)
                out_ref[...] = (acc_ref[...] * inv_l).astype(out_ref.dtype)
            else:
                out_ref[...] = (acc_ref[...] / l_ref[...]).astype(out_ref.dtype)


def factorized_softmax_embed(a1, a2_p, w_p, *, orig, tm=768, tn=1280,
                             num_active_rows=None):
    """softmax(a1 @ a2, -1) @ w, streamed over the `orig` axis.

    a2_p / w_p are the pre-cast, pre-padded tables from prepare_word2vec_params
    (compute dtype, orig padded to a multiple of tn, emb padded to 128).
    Returns the f32 (rows_p, emb_p) padded result; padded rows/cols are either
    zero or untouched garbage for skipped (inactive) row tiles and must be
    discarded by the caller.
    """
    rows, fac = a1.shape
    fac2, orig_p = a2_p.shape
    orig_p2, emb_p = w_p.shape
    assert fac == fac2 and orig_p == orig_p2 and emb_p % 128 == 0
    cd = a2_p.dtype

    tn = min(tn, orig_p)
    assert orig_p % tn == 0 and tn % 128 == 0, (
        "tn must match the tn used in prepare_word2vec_params")
    tm = min(tm, _round_up(rows, 8))
    rows_p = _round_up(rows, tm)
    n_row_blocks = rows_p // tm
    last_j = orig_p // tn - 1

    a1_p = a1.astype(cd)
    if rows_p != rows:
        a1_p = jnp.pad(a1_p, ((0, rows_p - rows), (0, 0)))

    if num_active_rows is None:
        nblk = jnp.full((1,), n_row_blocks, dtype=jnp.int32)
    else:
        nblk_scalar = (num_active_rows.astype(jnp.int32) + tm - 1) // tm
        nblk = jnp.reshape(jnp.clip(nblk_scalar, 0, n_row_blocks), (1,))

    kernel = functools.partial(
        _factorized_softmax_kernel,
        valid_cols=orig,
        needs_mask=(orig_p != orig),
        approx=(cd != jnp.float32))

    itemsize = jnp.dtype(cd).itemsize
    cost = pl.CostEstimate(
        flops=2 * rows_p * fac * orig_p + 2 * rows_p * orig_p * emb_p,
        transcendentals=rows_p * orig_p,
        bytes_accessed=(rows_p * fac * itemsize
                        + n_row_blocks * (fac * orig_p + orig_p * emb_p) * itemsize
                        + rows_p * emb_p * 4),
    )

    # Explicit scoped-VMEM request (v5e default is only 16 MiB; v7x has 64 MiB
    # physical) sized from the double-buffered tiles + f32 accumulator.
    vmem_est = (2 * (tm * fac + fac * tn + tn * emb_p) * itemsize
                + 2 * tm * emb_p * 4 + tm * emb_p * 4 + 4 * tm * 4)
    vmem_limit = int(min(max(vmem_est + (4 << 20), 32 << 20), 48 << 20))

    def a1_map(i, j, nb):
        return (jnp.minimum(i, jnp.maximum(nb[0] - 1, 0)), 0)

    def a2_map(i, j, nb):
        # For inactive row tiles stay on the last-visited block -> no re-DMA.
        return (0, jnp.where(i < nb[0], j, last_j))

    def w_map(i, j, nb):
        return (jnp.where(i < nb[0], j, last_j), 0)

    def out_map(i, j, nb):
        # Unclamped: each row tile owns its output block (garbage rows for
        # inactive tiles are discarded by the caller; no cross-core clobber).
        return (i, 0)

    out = pl.pallas_call(
        kernel,
        out_shape=jax.ShapeDtypeStruct((rows_p, emb_p), jnp.float32),
        grid_spec=pltpu.PrefetchScalarGridSpec(
            num_scalar_prefetch=1,
            grid=(n_row_blocks, orig_p // tn),
            in_specs=[
                pl.BlockSpec((tm, fac), a1_map),
                pl.BlockSpec((fac, tn), a2_map),
                pl.BlockSpec((tn, emb_p), w_map),
            ],
            out_specs=pl.BlockSpec((tm, emb_p), out_map),
            scratch_shapes=[
                pltpu.VMEM((tm, 1), jnp.float32),       # running max m
                pltpu.VMEM((tm, 1), jnp.float32),       # running denom l
                pltpu.VMEM((tm, emb_p), jnp.float32),   # f32 accumulator
            ],
        ),
        compiler_params=pltpu.CompilerParams(
            dimension_semantics=("parallel", "arbitrary"),
            vmem_limit_bytes=vmem_limit),
        cost_estimate=cost,
    )(nblk, a1_p, a2_p, w_p)
    return out                                           # (rows_p, emb_p) padded


# ---------------------------------------------------------------------------
# Kernel 2: skip-gram negative-sampling loss (lane-dense, batch-masked)
#   pos_loss = -logsigmoid( sum_d pos * emb_in )
#   neg_loss = -logsigmoid( - sum_k sum_d neg_k * emb_in )
#   out      = sum(mask * (pos_loss + neg_loss)) / B      -> (1, 1)
# ---------------------------------------------------------------------------
def _log_sigmoid(x):
    # numerically stable logsigmoid(x) = min(x, 0) - log(1 + exp(-|x|))
    return jnp.minimum(x, 0.0) - jnp.log(1.0 + jnp.exp(-jnp.abs(x)))


def _nsg_loss_kernel(emb_ref, pos_ref, neg_ref, out_ref, *, n_valid, dp, k):
    emb = emb_ref[...]                                                # (Bp, Dp)
    pos_score = jnp.sum(pos_ref[...] * emb, axis=1, keepdims=True)    # (Bp, 1)
    neg_score = jnp.zeros_like(pos_score)
    for kk in range(k):                                               # small static unroll
        neg_score = neg_score + jnp.sum(
            neg_ref[:, kk * dp:(kk + 1) * dp] * emb, axis=1, keepdims=True)
    loss = -_log_sigmoid(pos_score) - _log_sigmoid(-neg_score)
    row = jax.lax.broadcasted_iota(jnp.int32, loss.shape, 0)
    loss = jnp.where(row < n_valid, loss, 0.0)          # mask padded batch rows
    out_ref[...] = jnp.sum(loss, axis=0, keepdims=True) * (1.0 / n_valid)


def nsg_loss(emb_in, pos_emb, neg_emb):
    b, d = emb_in.shape
    k = neg_emb.shape[1]
    bp = _round_up(b, 8)
    dp = _round_up(d, 128)                 # no-op when fed the emb_p-padded flow

    def pad2(x):
        return jnp.pad(x.astype(jnp.float32), ((0, bp - b), (0, dp - d)))

    emb_pd = pad2(emb_in)
    pos_pd = pad2(pos_emb)
    neg_pd = jnp.pad(neg_emb.astype(jnp.float32),
                     ((0, bp - b), (0, 0), (0, dp - d))).reshape(bp, k * dp)

    # TODO(synk): tile over the batch axis with a (1,1) accumulator once the
    #             batch no longer fits a single VMEM block.
    out = pl.pallas_call(
        functools.partial(_nsg_loss_kernel, n_valid=b, dp=dp, k=k),
        out_shape=jax.ShapeDtypeStruct((1, 1), jnp.float32),
        grid_spec=pltpu.PrefetchScalarGridSpec(
            num_scalar_prefetch=0,
            grid=(1,),
            in_specs=[
                pl.BlockSpec((bp, dp), lambda i: (0, 0)),
                pl.BlockSpec((bp, dp), lambda i: (0, 0)),
                pl.BlockSpec((bp, k * dp), lambda i: (0, 0)),
            ],
            out_specs=pl.BlockSpec((1, 1), lambda i: (0, 0)),
        ),
    )(emb_pd, pos_pd, neg_pd)
    return out[0, 0]


# ---------------------------------------------------------------------------
# One-time parameter preparation (hoists the bf16 cast + padding of the big
# tables out of the per-step jit). Original f32 tables are kept for the
# original-vocab row gathers.
# ---------------------------------------------------------------------------
def prepare_word2vec_params(params, *, compute_dtype=jnp.bfloat16, tn=1280):
    prepared = {
        "W_original": params["W_original"],
        "V_original": params["V_original"],
        "A_W_1": params["A_W_1"],
        "A_V_1": params["A_V_1"],
    }
    for a2_key, w_key, dst_a2, dst_w in (("A_W_2", "W_original", "A_W_2_p", "W_p"),
                                         ("A_V_2", "V_original", "A_V_2_p", "V_p")):
        w = params[w_key]
        orig, emb = w.shape
        tn_eff = min(tn, _round_up(orig, 128))
        orig_p = _round_up(orig, tn_eff)
        emb_p = _round_up(emb, 128)
        a2 = params[a2_key].astype(compute_dtype)
        prepared[dst_a2] = jnp.pad(a2, ((0, 0), (0, orig_p - orig)))
        prepared[dst_w] = jnp.pad(w.astype(compute_dtype),
                                  ((0, orig_p - orig), (0, emb_p - emb)))
    return prepared


# ---------------------------------------------------------------------------
# Embedding lookup without materializing combined = concat(orig, new):
# new-vocab ids are compacted to the front so only they pay for a projection.
# ---------------------------------------------------------------------------
def _embed_lookup(ids, table_orig_f32, a1, a2_p, w_p, *, tm, tn):
    ids = ids.reshape(-1).astype(jnp.int32)
    orig, emb = table_orig_f32.shape
    emb_p = w_p.shape[1]
    new_rows = a1.shape[0]
    n = ids.shape[0]

    is_new = ids >= orig
    order = jnp.argsort(jnp.where(is_new, 0, 1))          # new-vocab ids first
    inv_order = jnp.argsort(order)
    n_active = jnp.sum(is_new).astype(jnp.int32)

    sorted_ids = jnp.take(ids, order, axis=0)
    a1_rows = jnp.take(a1, jnp.clip(sorted_ids - orig, 0, new_rows - 1), axis=0)
    new_emb_sorted = factorized_softmax_embed(
        a1_rows, a2_p, w_p, orig=orig, tm=tm, tn=tn, num_active_rows=n_active)
    new_emb = jnp.take(new_emb_sorted[:n], inv_order, axis=0)       # (n, emb_p)

    orig_emb = jnp.take(table_orig_f32, jnp.clip(ids, 0, orig - 1), axis=0)
    orig_emb = jnp.pad(orig_emb.astype(jnp.float32), ((0, 0), (0, emb_p - emb)))
    # Rows with is_new=False may carry garbage in new_emb (skipped tiles); the
    # where discards them. Padded emb columns are zero on both branches.
    return jnp.where(is_new[:, None], new_emb, orig_emb)


# ---------------------------------------------------------------------------
# Full forward pass (Pallas hot paths + tiny JAX glue for the row gathers)
# ---------------------------------------------------------------------------
@functools.partial(jax.jit, static_argnames=("tm", "tn"))
def word2vec_forward(prepared, in_ids, pos_out_ids, neg_out_ids, tm=768, tn=1280):
    # NOTE: the module's self.combined_W / self.combined_V caching side-effect
    # is intentionally not materialized — the loss only needs the B*(K+2)
    # gathered rows, which are computed directly.
    W_orig = prepared["W_original"]
    V_orig = prepared["V_original"]
    b = pos_out_ids.shape[0]
    k = neg_out_ids.shape[1]

    emb_in = _embed_lookup(in_ids, W_orig, prepared["A_W_1"],
                           prepared["A_W_2_p"], prepared["W_p"], tm=tm, tn=tn)
    v_ids = jnp.concatenate([pos_out_ids.reshape(-1), neg_out_ids.reshape(-1)])
    v_emb = _embed_lookup(v_ids, V_orig, prepared["A_V_1"],
                          prepared["A_V_2_p"], prepared["V_p"], tm=tm, tn=tn)
    pos_emb = v_emb[:b]
    neg_emb = v_emb[b:].reshape(b, k, -1)

    return nsg_loss(emb_in, pos_emb, neg_emb)


# ---------------------------------------------------------------------------
# Pure-JAX reference mirroring the PyTorch module. `compute_dtype` optionally
# quantizes the matmul operands the same way the kernel's bf16 path does
# (softmax and accumulation stay in f32).
# ---------------------------------------------------------------------------
def word2vec_reference(params, in_ids, pos_out_ids, neg_out_ids,
                       compute_dtype=jnp.float32):
    cd = compute_dtype
    W = params["W_original"]
    V = params["V_original"]

    def new_table(a1, a2, tbl):
        logits = jnp.dot(a1.astype(cd), a2.astype(cd),
                         preferred_element_type=jnp.float32)
        p = jax.nn.softmax(logits, axis=-1)
        return jnp.dot(p.astype(cd), tbl.astype(cd),
                       preferred_element_type=jnp.float32)

    combined_W = jnp.concatenate([W, new_table(params["A_W_1"], params["A_W_2"], W)], 0)
    combined_V = jnp.concatenate([V, new_table(params["A_V_1"], params["A_V_2"], V)], 0)
    emb_in = combined_W[in_ids]
    pos_emb = combined_V[pos_out_ids]
    neg_emb = combined_V[neg_out_ids]
    pos_s = jnp.sum(pos_emb * emb_in, axis=1)
    neg_s = jnp.sum(jnp.einsum("bkd,bd->bk", neg_emb, emb_in), axis=1)
    loss = -jax.nn.log_sigmoid(pos_s) - jax.nn.log_sigmoid(-neg_s)
    return jnp.mean(loss)


if __name__ == "__main__":
    # Small stand-ins for (original=32000, new=31199, fac=1024) that still
    # exercise padding/masking: emb not a multiple of 128, batch not of 8,
    # orig not a multiple of the column tile, mixed orig/new ids.
    original_size = 320
    new_size = 96
    factorized_dim = 128
    embedding_dim = 96
    batch = 10
    n_neg = 5

    key = jax.random.PRNGKey(0)
    ks = jax.random.split(key, 9)

    params = {
        "W_original": jax.random.normal(ks[0], (original_size, embedding_dim), jnp.float32),
        "V_original": jax.random.normal(ks[1], (original_size, embedding_dim), jnp.float32),
        # torch.rand -> uniform [0, 1)
        "A_W_1": jax.random.uniform(ks[2], (new_size, factorized_dim), jnp.float32),
        "A_W_2": jax.random.uniform(ks[3], (factorized_dim, original_size), jnp.float32),
        "A_V_1": jax.random.uniform(ks[4], (new_size, factorized_dim), jnp.float32),
        "A_V_2": jax.random.uniform(ks[5], (factorized_dim, original_size), jnp.float32),
    }

    vocab_total = original_size + new_size
    in_ids = jax.random.randint(ks[6], (batch,), 0, vocab_total, jnp.int32)
    pos_out_ids = jax.random.randint(ks[7], (batch,), 0, vocab_total, jnp.int32)
    neg_out_ids = jax.random.randint(ks[8], (batch, n_neg), 0, vocab_total, jnp.int32)

    # Small tiles so the online-softmax reduction axis takes several steps, the
    # last-tile column mask gating triggers, and the inactive-row-tile skip
    # path is exercised (production defaults are tm=768, tn=1280).
    tm, tn = 32, 128

    # 1) f32 compute path: must match the exact-math reference tightly.
    prep_f32 = prepare_word2vec_params(params, compute_dtype=jnp.float32, tn=tn)
    loss_f32 = word2vec_forward(prep_f32, in_ids, pos_out_ids, neg_out_ids, tm=tm, tn=tn)
    loss_f32 = jax.block_until_ready(loss_f32)
    ref_f32 = word2vec_reference(params, in_ids, pos_out_ids, neg_out_ids)
    assert jnp.allclose(loss_f32, ref_f32, rtol=1e-4, atol=1e-4), (loss_f32, ref_f32)

    # 2) bf16 MXU fast path (production default): checked against a reference
    #    with identically quantized matmul operands.
    prep_bf16 = prepare_word2vec_params(params, compute_dtype=jnp.bfloat16, tn=tn)
    loss_bf16 = word2vec_forward(prep_bf16, in_ids, pos_out_ids, neg_out_ids, tm=tm, tn=tn)
    loss_bf16 = jax.block_until_ready(loss_bf16)
    ref_bf16 = word2vec_reference(params, in_ids, pos_out_ids, neg_out_ids,
                                  compute_dtype=jnp.bfloat16)
    assert jnp.allclose(loss_bf16, ref_bf16, rtol=2e-2, atol=2e-2), (loss_bf16, ref_bf16)

    print("KERNEL_OK")
</pallas_src>

<mosaic_0001>
module attributes {stable_mosaic.version = 11 : i64} {
  func.func @_factorized_softmax_kernel(%arg0: i32, %arg1: i32, %arg2: memref<1xi32, #tpu.memory_space<smem>>, %arg3: memref<16x128xf32, #tpu.memory_space<vmem>>, %arg4: memref<128x128xf32, #tpu.memory_space<vmem>>, %arg5: memref<128x128xf32, #tpu.memory_space<vmem>>, %arg6: memref<16x128xf32, #tpu.memory_space<vmem>>, %arg7: memref<16x1xf32, #tpu.memory_space<vmem>>, %arg8: memref<16x1xf32, #tpu.memory_space<vmem>>, %arg9: memref<16x128xf32, #tpu.memory_space<vmem>>) attributes {dimension_semantics = [#tpu.dimension_semantics<parallel>, #tpu.dimension_semantics<arbitrary>], iteration_bounds = array<i64: 1, 3>, scalar_prefetch = 1 : i64, scratch_operands = 3 : i64, tpu.core_type = #tpu.core_type<tc>, window_params = [{transform_indices = @transform_0, window_bounds = array<i64: 16, 128>}, {transform_indices = @transform_1, window_bounds = array<i64: 128, 128>}, {transform_indices = @transform_2, window_bounds = array<i64: 128, 128>}, {transform_indices = @transform_3, window_bounds = array<i64: 16, 128>}]} {
    %c0 = arith.constant 0 : index
    %0 = memref.load %arg2[%c0] : memref<1xi32, #tpu.memory_space<smem>>
    %1 = arith.cmpi slt, %arg0, %0 : i32
    %2 = arith.extui %1 : i1 to i32
    %c0_i32 = arith.constant 0 : i32
    %3 = arith.cmpi ne, %2, %c0_i32 : i32
    scf.if %3 {
      %c0_i32_0 = arith.constant 0 : i32
      %4 = arith.cmpi eq, %arg1, %c0_i32_0 : i32
      %5 = arith.extui %4 : i1 to i32
      %c0_i32_1 = arith.constant 0 : i32
      %6 = arith.cmpi ne, %5, %c0_i32_1 : i32
      scf.if %6 {
        %cst_11 = arith.constant 0xFF800000 : f32
        %19 = vector.broadcast %cst_11 : f32 to vector<16x1xf32>
        %c0_12 = arith.constant 0 : index
        %c0_13 = arith.constant 0 : index
        %20 = vector.load %arg7[%c0_12, %c0_13] : memref<16x1xf32, #tpu.memory_space<vmem>>, vector<16x1xf32>
        tpu.vector_store %arg7[%c0_12, %c0_13], %19 {strides = array<i32>} : memref<16x1xf32, #tpu.memory_space<vmem>>, vector<16x1xf32>,
        %cst_14 = arith.constant 0.000000e+00 : f32
        %21 = vector.broadcast %cst_14 : f32 to vector<16x1xf32>
        %c0_15 = arith.constant 0 : index
        %c0_16 = arith.constant 0 : index
        %22 = vector.load %arg8[%c0_15, %c0_16] : memref<16x1xf32, #tpu.memory_space<vmem>>, vector<16x1xf32>
        tpu.vector_store %arg8[%c0_15, %c0_16], %21 {strides = array<i32>} : memref<16x1xf32, #tpu.memory_space<vmem>>, vector<16x1xf32>,
        %cst_17 = arith.constant 0.000000e+00 : f32
        %23 = vector.broadcast %cst_17 : f32 to vector<16x128xf32>
        %c0_18 = arith.constant 0 : index
        %c0_19 = arith.constant 0 : index
        %24 = vector.load %arg9[%c0_18, %c0_19] : memref<16x128xf32, #tpu.memory_space<vmem>>, vector<16x128xf32>
        tpu.vector_store %arg9[%c0_18, %c0_19], %23 {strides = array<i32>} : memref<16x128xf32, #tpu.memory_space<vmem>>, vector<16x128xf32>,
      } else {
      }
      %c0_2 = arith.constant 0 : index
      %c0_3 = arith.constant 0 : index
      %7 = vector.load %arg3[%c0_2, %c0_3] : memref<16x128xf32, #tpu.memory_space<vmem>>, vector<16x128xf32>
      %c0_4 = arith.constant 0 : index
      %c0_5 = arith.constant 0 : index
      %8 = vector.load %arg4[%c0_4, %c0_5] : memref<128x128xf32, #tpu.memory_space<vmem>>, vector<128x128xf32>
      %cst = arith.constant dense<0.000000e+00> : vector<16x128xf32>
      %9 = tpu.matmul %7, %8, %cst {dimension_numbers = #tpu.dot_dimension_numbers<[1], [0], [0], [1], [0, 0, 1, 1], [], []>} : vector<16x128xf32>, vector<128x128xf32>, vector<16x128xf32> -> vector<16x128xf32>
      %c2_i32 = arith.constant 2 : i32
      %10 = arith.cmpi eq, %arg1, %c2_i32 : i32
      %11 = arith.extui %10 : i1 to i32
      %c0_i32_6 = arith.constant 0 : i32
      %12 = arith.cmpi ne, %11, %c0_i32_6 : i32
      scf.if %12 {
        %c128_i32 = arith.constant 128 : i32
        %19 = arith.muli %arg1, %c128_i32 : i32
        %20 = tpu.iota {dimensions = array<i32: 1>} : vector<16x128xi32>
        %21 = vector.broadcast %19 : i32 to vector<16x128xi32>
        %22 = arith.addi %21, %20 : vector<16x128xi32>
        %c320_i32 = arith.constant 320 : i32
        %23 = vector.broadcast %c320_i32 : i32 to vector<16x128xi32>
        %24 = arith.cmpi slt, %22, %23 : vector<16x128xi32>
        %cst_11 = arith.constant 0xFF800000 : f32
        %25 = vector.broadcast %cst_11 : f32 to vector<16x128xf32>
        %26 = arith.select %24, %9, %25 : vector<16x128xi1>, vector<16x128xf32>
        %c0_12 = arith.constant 0 : index
        %c0_13 = arith.constant 0 : index
        %27 = vector.load %arg7[%c0_12, %c0_13] : memref<16x1xf32, #tpu.memory_space<vmem>>, vector<16x1xf32>
        %cst_14 = arith.constant dense<0xFF800000> : vector<16xf32>
        %28 = vector.multi_reduction <maximumf>, %26, %cst_14 [1] : vector<16x128xf32> to vector<16xf32>
        %29 = vector.shape_cast %28 : vector<16xf32> to vector<16x1xf32>
        %30 = arith.maximumf %27, %29 : vector<16x1xf32>
        %31 = arith.subf %27, %30 : vector<16x1xf32>
        %32 = math.exp %31 : vector<16x1xf32>
        %33 = vector.broadcast %30 : vector<16x1xf32> to vector<16x128xf32>
        %34 = arith.subf %26, %33 : vector<16x128xf32>
        %35 = math.exp %34 : vector<16x128xf32>
        %c0_15 = arith.constant 0 : index
        %c0_16 = arith.constant 0 : index
        %36 = vector.load %arg8[%c0_15, %c0_16] : memref<16x1xf32, #tpu.memory_space<vmem>>, vector<16x1xf32>
        %37 = arith.mulf %32, %36 : vector<16x1xf32>
        %cst_17 = arith.constant dense<0.000000e+00> : vector<16xf32>
        %38 = vector.multi_reduction <add>, %35, %cst_17 [1] : vector<16x128xf32> to vector<16xf32>
        %39 = vector.shape_cast %38 : vector<16xf32> to vector<16x1xf32>
        %40 = arith.addf %37, %39 : vector<16x1xf32>
        %c0_18 = arith.constant 0 : index
        %c0_19 = arith.constant 0 : index
        %41 = vector.load %arg8[%c0_18, %c0_19] : memref<16x1xf32, #tpu.memory_space<vmem>>, vector<16x1xf32>
        tpu.vector_store %arg8[%c0_18, %c0_19], %40 {strides = array<i32>} : memref<16x1xf32, #tpu.memory_space<vmem>>, vector<16x1xf32>,
        %c0_20 = arith.constant 0 : index
        %c0_21 = arith.constant 0 : index
        %42 = vector.load %arg9[%c0_20, %c0_21] : memref<16x128xf32, #tpu.memory_space<vmem>>, vector<16x128xf32>
        %43 = vector.broadcast %32 : vector<16x1xf32> to vector<16x128xf32>
        %44 = arith.mulf %43, %42 : vector<16x128xf32>
        %c0_22 = arith.constant 0 : index
        %c0_23 = arith.constant 0 : index
        %45 = vector.load %arg5[%c0_22, %c0_23] : memref<128x128xf32, #tpu.memory_space<vmem>>, vector<128x128xf32>
        %cst_24 = arith.constant dense<0.000000e+00> : vector<16x128xf32>
        %46 = tpu.matmul %35, %45, %cst_24 {dimension_numbers = #tpu.dot_dimension_numbers<[1], [0], [0], [1], [0, 0, 1, 1], [], []>} : vector<16x128xf32>, vector<128x128xf32>, vector<16x128xf32> -> vector<16x128xf32>
        %47 = arith.addf %44, %46 : vector<16x128xf32>
        %c0_25 = arith.constant 0 : index
        %c0_26 = arith.constant 0 : index
        %48 = vector.load %arg9[%c0_25, %c0_26] : memref<16x128xf32, #tpu.memory_space<vmem>>, vector<16x128xf32>
        tpu.vector_store %arg9[%c0_25, %c0_26], %47 {strides = array<i32>} : memref<16x128xf32, #tpu.memory_space<vmem>>, vector<16x128xf32>,
        %c0_27 = arith.constant 0 : index
        %c0_28 = arith.constant 0 : index
        %49 = vector.load %arg7[%c0_27, %c0_28] : memref<16x1xf32, #tpu.memory_space<vmem>>, vector<16x1xf32>
        tpu.vector_store %arg7[%c0_27, %c0_28], %30 {strides = array<i32>} : memref<16x1xf32, #tpu.memory_space<vmem>>, vector<16x1xf32>,
      } else {
      }
      %c2_i32_7 = arith.constant 2 : i32
      %13 = arith.cmpi ne, %arg1, %c2_i32_7 : i32
      %14 = arith.extui %13 : i1 to i32
      %c0_i32_8 = arith.constant 0 : i32
      %15 = arith.cmpi ne, %14, %c0_i32_8 : i32
      scf.if %15 {
        %c0_11 = arith.constant 0 : index
        %c0_12 = arith.constant 0 : index
        %19 = vector.load %arg7[%c0_11, %c0_12] : memref<16x1xf32, #tpu.memory_space<vmem>>, vector<16x1xf32>
        %cst_13 = arith.constant dense<0xFF800000> : vector<16xf32>
        %20 = vector.multi_reduction <maximumf>, %9, %cst_13 [1] : vector<16x128xf32> to vector<16xf32>
        %21 = vector.shape_cast %20 : vector<16xf32> to vector<16x1xf32>
        %22 = arith.maximumf %19, %21 : vector<16x1xf32>
        %23 = arith.subf %19, %22 : vector<16x1xf32>
        %24 = math.exp %23 : vector<16x1xf32>
        %25 = vector.broadcast %22 : vector<16x1xf32> to vector<16x128xf32>
        %26 = arith.subf %9, %25 : vector<16x128xf32>
        %27 = math.exp %26 : vector<16x128xf32>
        %c0_14 = arith.constant 0 : index
        %c0_15 = arith.constant 0 : index
        %28 = vector.load %arg8[%c0_14, %c0_15] : memref<16x1xf32, #tpu.memory_space<vmem>>, vector<16x1xf32>
        %29 = arith.mulf %24, %28 : vector<16x1xf32>
        %cst_16 = arith.constant dense<0.000000e+00> : vector<16xf32>
        %30 = vector.multi_reduction <add>, %27, %cst_16 [1] : vector<16x128xf32> to vector<16xf32>
        %31 = vector.shape_cast %30 : vector<16xf32> to vector<16x1xf32>
        %32 = arith.addf %29, %31 : vector<16x1xf32>
        %c0_17 = arith.constant 0 : index
        %c0_18 = arith.constant 0 : index
        %33 = vector.load %arg8[%c0_17, %c0_18] : memref<16x1xf32, #tpu.memory_space<vmem>>, vector<16x1xf32>
        tpu.vector_store %arg8[%c0_17, %c0_18], %32 {strides = array<i32>} : memref<16x1xf32, #tpu.memory_space<vmem>>, vector<16x1xf32>,
        %c0_19 = arith.constant 0 : index
        %c0_20 = arith.constant 0 : index
        %34 = vector.load %arg9[%c0_19, %c0_20] : memref<16x128xf32, #tpu.memory_space<vmem>>, vector<16x128xf32>
        %35 = vector.broadcast %24 : vector<16x1xf32> to vector<16x128xf32>
        %36 = arith.mulf %35, %34 : vector<16x128xf32>
        %c0_21 = arith.constant 0 : index
        %c0_22 = arith.constant 0 : index
        %37 = vector.load %arg5[%c0_21, %c0_22] : memref<128x128xf32, #tpu.memory_space<vmem>>, vector<128x128xf32>
        %cst_23 = arith.constant dense<0.000000e+00> : vector<16x128xf32>
        %38 = tpu.matmul %27, %37, %cst_23 {dimension_numbers = #tpu.dot_dimension_numbers<[1], [0], [0], [1], [0, 0, 1, 1], [], []>} : vector<16x128xf32>, vector<128x128xf32>, vector<16x128xf32> -> vector<16x128xf32>
        %39 = arith.addf %36, %38 : vector<16x128xf32>
        %c0_24 = arith.constant 0 : index
        %c0_25 = arith.constant 0 : index
        %40 = vector.load %arg9[%c0_24, %c0_25] : memref<16x128xf32, #tpu.memory_space<vmem>>, vector<16x128xf32>
        tpu.vector_store %arg9[%c0_24, %c0_25], %39 {strides = array<i32>} : memref<16x128xf32, #tpu.memory_space<vmem>>, vector<16x128xf32>,
        %c0_26 = arith.constant 0 : index
        %c0_27 = arith.constant 0 : index
        %41 = vector.load %arg7[%c0_26, %c0_27] : memref<16x1xf32, #tpu.memory_space<vmem>>, vector<16x1xf32>
        tpu.vector_store %arg7[%c0_26, %c0_27], %22 {strides = array<i32>} : memref<16x1xf32, #tpu.memory_space<vmem>>, vector<16x1xf32>,
      } else {
      }
      %c2_i32_9 = arith.constant 2 : i32
      %16 = arith.cmpi eq, %arg1, %c2_i32_9 : i32
      %17 = arith.extui %16 : i1 to i32
      %c0_i32_10 = arith.constant 0 : i32
      %18 = arith.cmpi ne, %17, %c0_i32_10 : i32
      scf.if %18 {
        %c0_11 = arith.constant 0 : index
        %c0_12 = arith.constant 0 : index
        %19 = vector.load %arg9[%c0_11, %c0_12] : memref<16x128xf32, #tpu.memory_space<vmem>>, vector<16x128xf32>
        %c0_13 = arith.constant 0 : index
        %c0_14 = arith.constant 0 : index
        %20 = vector.load %arg8[%c0_13, %c0_14] : memref<16x1xf32, #tpu.memory_space<vmem>>, vector<16x1xf32>
        %21 = vector.broadcast %20 : vector<16x1xf32> to vector<16x128xf32>
        %22 = arith.divf %19, %21 : vector<16x128xf32>
        %c0_15 = arith.constant 0 : index
        %c0_16 = arith.constant 0 : index
        %23 = vector.load %arg6[%c0_15, %c0_16] : memref<16x128xf32, #tpu.memory_space<vmem>>, vector<16x128xf32>
        tpu.vector_store %arg6[%c0_15, %c0_16], %22 {strides = array<i32>} : memref<16x128xf32, #tpu.memory_space<vmem>>, vector<16x128xf32>,
      } else {
      }
    } else {
    }
    return
  }
  func.func @transform_0(%arg0: i32, %arg1: i32, %arg2: memref<1xi32, #tpu.memory_space<smem>>) -> (i32, i32) {
    %c0 = arith.constant 0 : index
    %0 = memref.load %arg2[%c0] : memref<1xi32, #tpu.memory_space<smem>>
    %c1_i32 = arith.constant 1 : i32
    %1 = arith.subi %0, %c1_i32 : i32
    %c0_i32 = arith.constant 0 : i32
    %2 = arith.maxsi %1, %c0_i32 : i32
    %3 = arith.minsi %arg0, %2 : i32
    %c0_i32_0 = arith.constant 0 : i32
    %c0_i32_1 = arith.constant 0 : i32
    return %3, %c0_i32_0 : i32, i32
  }
  func.func @transform_1(%arg0: i32, %arg1: i32, %arg2: memref<1xi32, #tpu.memory_space<smem>>) -> (i32, i32) {
    %c0 = arith.constant 0 : index
    %0 = memref.load %arg2[%c0] : memref<1xi32, #tpu.memory_space<smem>>
    %1 = arith.cmpi slt, %arg0, %0 : i32
    %c2_i32 = arith.constant 2 : i32
    %2 = arith.select %1, %arg1, %c2_i32 : i32
    %c0_i32 = arith.constant 0 : i32
    %c0_i32_0 = arith.constant 0 : i32
    return %c0_i32, %2 : i32, i32
  }
  func.func @transform_2(%arg0: i32, %arg1: i32, %arg2: memref<1xi32, #tpu.memory_space<smem>>) -> (i32, i32) {
    %c0 = arith.constant 0 : index
    %0 = memref.load %arg2[%c0] : memref<1xi32, #tpu.memory_space<smem>>
    %1 = arith.cmpi slt, %arg0, %0 : i32
    %c2_i32 = arith.constant 2 : i32
    %2 = arith.select %1, %arg1, %c2_i32 : i32
    %c0_i32 = arith.constant 0 : i32
    %c0_i32_0 = arith.constant 0 : i32
    return %2, %c0_i32 : i32, i32
  }
  func.func @transform_3(%arg0: i32, %arg1: i32, %arg2: memref<1xi32, #tpu.memory_space<smem>>) -> (i32, i32) {
    %c0_i32 = arith.constant 0 : i32
    %c0_i32_0 = arith.constant 0 : i32
    return %arg0, %c0_i32 : i32, i32
  }
}

module attributes {stable_mosaic.version = 11 : i64} {
  func.func @_factorized_softmax_kernel(%arg0: i32, %arg1: i32, %arg2: memref<1xi32, #tpu.memory_space<smem>>, %arg3: memref<32x128xf32, #tpu.memory_space<vmem>>, %arg4: memref<128x128xf32, #tpu.memory_space<vmem>>, %arg5: memref<128x128xf32, #tpu.memory_space<vmem>>, %arg6: memref<32x128xf32, #tpu.memory_space<vmem>>, %arg7: memref<32x1xf32, #tpu.memory_space<vmem>>, %arg8: memref<32x1xf32, #tpu.memory_space<vmem>>, %arg9: memref<32x128xf32, #tpu.memory_space<vmem>>) attributes {dimension_semantics = [#tpu.dimension_semantics<parallel>, #tpu.dimension_semantics<arbitrary>], iteration_bounds = array<i64: 2, 3>, scalar_prefetch = 1 : i64, scratch_operands = 3 : i64, tpu.core_type = #tpu.core_type<tc>, window_params = [{transform_indices = @transform_0, window_bounds = array<i64: 32, 128>}, {transform_indices = @transform_1, window_bounds = array<i64: 128, 128>}, {transform_indices = @transform_2, window_bounds = array<i64: 128, 128>}, {transform_indices = @transform_3, window_bounds = array<i64: 32, 128>}]} {
    %c0 = arith.constant 0 : index
    %0 = memref.load %arg2[%c0] : memref<1xi32, #tpu.memory_space<smem>>
    %1 = arith.cmpi slt, %arg0, %0 : i32
    %2 = arith.extui %1 : i1 to i32
    %c0_i32 = arith.constant 0 : i32
    %3 = arith.cmpi ne, %2, %c0_i32 : i32
    scf.if %3 {
      %c0_i32_0 = arith.constant 0 : i32
      %4 = arith.cmpi eq, %arg1, %c0_i32_0 : i32
      %5 = arith.extui %4 : i1 to i32
      %c0_i32_1 = arith.constant 0 : i32
      %6 = arith.cmpi ne, %5, %c0_i32_1 : i32
      scf.if %6 {
        %cst_11 = arith.constant 0xFF800000 : f32
        %19 = vector.broadcast %cst_11 : f32 to vector<32x1xf32>
        %c0_12 = arith.constant 0 : index
        %c0_13 = arith.constant 0 : index
        %20 = vector.load %arg7[%c0_12, %c0_13] : memref<32x1xf32, #tpu.memory_space<vmem>>, vector<32x1xf32>
        tpu.vector_store %arg7[%c0_12, %c0_13], %19 {strides = array<i32>} : memref<32x1xf32, #tpu.memory_space<vmem>>, vector<32x1xf32>,
        %cst_14 = arith.constant 0.000000e+00 : f32
        %21 = vector.broadcast %cst_14 : f32 to vector<32x1xf32>
        %c0_15 = arith.constant 0 : index
        %c0_16 = arith.constant 0 : index
        %22 = vector.load %arg8[%c0_15, %c0_16] : memref<32x1xf32, #tpu.memory_space<vmem>>, vector<32x1xf32>
        tpu.vector_store %arg8[%c0_15, %c0_16], %21 {strides = array<i32>} : memref<32x1xf32, #tpu.memory_space<vmem>>, vector<32x1xf32>,
        %cst_17 = arith.constant 0.000000e+00 : f32
        %23 = vector.broadcast %cst_17 : f32 to vector<32x128xf32>
        %c0_18 = arith.constant 0 : index
        %c0_19 = arith.constant 0 : index
        %24 = vector.load %arg9[%c0_18, %c0_19] : memref<32x128xf32, #tpu.memory_space<vmem>>, vector<32x128xf32>
        tpu.vector_store %arg9[%c0_18, %c0_19], %23 {strides = array<i32>} : memref<32x128xf32, #tpu.memory_space<vmem>>, vector<32x128xf32>,
      } else {
      }
      %c0_2 = arith.constant 0 : index
      %c0_3 = arith.constant 0 : index
      %7 = vector.load %arg3[%c0_2, %c0_3] : memref<32x128xf32, #tpu.memory_space<vmem>>, vector<32x128xf32>
      %c0_4 = arith.constant 0 : index
      %c0_5 = arith.constant 0 : index
      %8 = vector.load %arg4[%c0_4, %c0_5] : memref<128x128xf32, #tpu.memory_space<vmem>>, vector<128x128xf32>
      %cst = arith.constant dense<0.000000e+00> : vector<32x128xf32>
      %9 = tpu.matmul %7, %8, %cst {dimension_numbers = #tpu.dot_dimension_numbers<[1], [0], [0], [1], [0, 0, 1, 1], [], []>} : vector<32x128xf32>, vector<128x128xf32>, vector<32x128xf32> -> vector<32x128xf32>
      %c2_i32 = arith.constant 2 : i32
      %10 = arith.cmpi eq, %arg1, %c2_i32 : i32
      %11 = arith.extui %10 : i1 to i32
      %c0_i32_6 = arith.constant 0 : i32
      %12 = arith.cmpi ne, %11, %c0_i32_6 : i32
      scf.if %12 {
        %c128_i32 = arith.constant 128 : i32
        %19 = arith.muli %arg1, %c128_i32 : i32
        %20 = tpu.iota {dimensions = array<i32: 1>} : vector<32x128xi32>
        %21 = vector.broadcast %19 : i32 to vector<32x128xi32>
        %22 = arith.addi %21, %20 : vector<32x128xi32>
        %c320_i32 = arith.constant 320 : i32
        %23 = vector.broadcast %c320_i32 : i32 to vector<32x128xi32>
        %24 = arith.cmpi slt, %22, %23 : vector<32x128xi32>
        %cst_11 = arith.constant 0xFF800000 : f32
        %25 = vector.broadcast %cst_11 : f32 to vector<32x128xf32>
        %26 = arith.select %24, %9, %25 : vector<32x128xi1>, vector<32x128xf32>
        %c0_12 = arith.constant 0 : index
        %c0_13 = arith.constant 0 : index
        %27 = vector.load %arg7[%c0_12, %c0_13] : memref<32x1xf32, #tpu.memory_space<vmem>>, vector<32x1xf32>
        %cst_14 = arith.constant dense<0xFF800000> : vector<32xf32>
        %28 = vector.multi_reduction <maximumf>, %26, %cst_14 [1] : vector<32x128xf32> to vector<32xf32>
        %29 = vector.shape_cast %28 : vector<32xf32> to vector<32x1xf32>
        %30 = arith.maximumf %27, %29 : vector<32x1xf32>
        %31 = arith.subf %27, %30 : vector<32x1xf32>
        %32 = math.exp %31 : vector<32x1xf32>
        %33 = vector.broadcast %30 : vector<32x1xf32> to vector<32x128xf32>
        %34 = arith.subf %26, %33 : vector<32x128xf32>
        %35 = math.exp %34 : vector<32x128xf32>
        %c0_15 = arith.constant 0 : index
        %c0_16 = arith.constant 0 : index
        %36 = vector.load %arg8[%c0_15, %c0_16] : memref<32x1xf32, #tpu.memory_space<vmem>>, vector<32x1xf32>
        %37 = arith.mulf %32, %36 : vector<32x1xf32>
        %cst_17 = arith.constant dense<0.000000e+00> : vector<32xf32>
        %38 = vector.multi_reduction <add>, %35, %cst_17 [1] : vector<32x128xf32> to vector<32xf32>
        %39 = vector.shape_cast %38 : vector<32xf32> to vector<32x1xf32>
        %40 = arith.addf %37, %39 : vector<32x1xf32>
        %c0_18 = arith.constant 0 : index
        %c0_19 = arith.constant 0 : index
        %41 = vector.load %arg8[%c0_18, %c0_19] : memref<32x1xf32, #tpu.memory_space<vmem>>, vector<32x1xf32>
        tpu.vector_store %arg8[%c0_18, %c0_19], %40 {strides = array<i32>} : memref<32x1xf32, #tpu.memory_space<vmem>>, vector<32x1xf32>,
        %c0_20 = arith.constant 0 : index
        %c0_21 = arith.constant 0 : index
        %42 = vector.load %arg9[%c0_20, %c0_21] : memref<32x128xf32, #tpu.memory_space<vmem>>, vector<32x128xf32>
        %43 = vector.broadcast %32 : vector<32x1xf32> to vector<32x128xf32>
        %44 = arith.mulf %43, %42 : vector<32x128xf32>
        %c0_22 = arith.constant 0 : index
        %c0_23 = arith.constant 0 : index
        %45 = vector.load %arg5[%c0_22, %c0_23] : memref<128x128xf32, #tpu.memory_space<vmem>>, vector<128x128xf32>
        %cst_24 = arith.constant dense<0.000000e+00> : vector<32x128xf32>
        %46 = tpu.matmul %35, %45, %cst_24 {dimension_numbers = #tpu.dot_dimension_numbers<[1], [0], [0], [1], [0, 0, 1, 1], [], []>} : vector<32x128xf32>, vector<128x128xf32>, vector<32x128xf32> -> vector<32x128xf32>
        %47 = arith.addf %44, %46 : vector<32x128xf32>
        %c0_25 = arith.constant 0 : index
        %c0_26 = arith.constant 0 : index
        %48 = vector.load %arg9[%c0_25, %c0_26] : memref<32x128xf32, #tpu.memory_space<vmem>>, vector<32x128xf32>
        tpu.vector_store %arg9[%c0_25, %c0_26], %47 {strides = array<i32>} : memref<32x128xf32, #tpu.memory_space<vmem>>, vector<32x128xf32>,
        %c0_27 = arith.constant 0 : index
        %c0_28 = arith.constant 0 : index
        %49 = vector.load %arg7[%c0_27, %c0_28] : memref<32x1xf32, #tpu.memory_space<vmem>>, vector<32x1xf32>
        tpu.vector_store %arg7[%c0_27, %c0_28], %30 {strides = array<i32>} : memref<32x1xf32, #tpu.memory_space<vmem>>, vector<32x1xf32>,
      } else {
      }
      %c2_i32_7 = arith.constant 2 : i32
      %13 = arith.cmpi ne, %arg1, %c2_i32_7 : i32
      %14 = arith.extui %13 : i1 to i32
      %c0_i32_8 = arith.constant 0 : i32
      %15 = arith.cmpi ne, %14, %c0_i32_8 : i32
      scf.if %15 {
        %c0_11 = arith.constant 0 : index
        %c0_12 = arith.constant 0 : index
        %19 = vector.load %arg7[%c0_11, %c0_12] : memref<32x1xf32, #tpu.memory_space<vmem>>, vector<32x1xf32>
        %cst_13 = arith.constant dense<0xFF800000> : vector<32xf32>
        %20 = vector.multi_reduction <maximumf>, %9, %cst_13 [1] : vector<32x128xf32> to vector<32xf32>
        %21 = vector.shape_cast %20 : vector<32xf32> to vector<32x1xf32>
        %22 = arith.maximumf %19, %21 : vector<32x1xf32>
        %23 = arith.subf %19, %22 : vector<32x1xf32>
        %24 = math.exp %23 : vector<32x1xf32>
        %25 = vector.broadcast %22 : vector<32x1xf32> to vector<32x128xf32>
        %26 = arith.subf %9, %25 : vector<32x128xf32>
        %27 = math.exp %26 : vector<32x128xf32>
        %c0_14 = arith.constant 0 : index
        %c0_15 = arith.constant 0 : index
        %28 = vector.load %arg8[%c0_14, %c0_15] : memref<32x1xf32, #tpu.memory_space<vmem>>, vector<32x1xf32>
        %29 = arith.mulf %24, %28 : vector<32x1xf32>
        %cst_16 = arith.constant dense<0.000000e+00> : vector<32xf32>
        %30 = vector.multi_reduction <add>, %27, %cst_16 [1] : vector<32x128xf32> to vector<32xf32>
        %31 = vector.shape_cast %30 : vector<32xf32> to vector<32x1xf32>
        %32 = arith.addf %29, %31 : vector<32x1xf32>
        %c0_17 = arith.constant 0 : index
        %c0_18 = arith.constant 0 : index
        %33 = vector.load %arg8[%c0_17, %c0_18] : memref<32x1xf32, #tpu.memory_space<vmem>>, vector<32x1xf32>
        tpu.vector_store %arg8[%c0_17, %c0_18], %32 {strides = array<i32>} : memref<32x1xf32, #tpu.memory_space<vmem>>, vector<32x1xf32>,
        %c0_19 = arith.constant 0 : index
        %c0_20 = arith.constant 0 : index
        %34 = vector.load %arg9[%c0_19, %c0_20] : memref<32x128xf32, #tpu.memory_space<vmem>>, vector<32x128xf32>
        %35 = vector.broadcast %24 : vector<32x1xf32> to vector<32x128xf32>
        %36 = arith.mulf %35, %34 : vector<32x128xf32>
        %c0_21 = arith.constant 0 : index
        %c0_22 = arith.constant 0 : index
        %37 = vector.load %arg5[%c0_21, %c0_22] : memref<128x128xf32, #tpu.memory_space<vmem>>, vector<128x128xf32>
        %cst_23 = arith.constant dense<0.000000e+00> : vector<32x128xf32>
        %38 = tpu.matmul %27, %37, %cst_23 {dimension_numbers = #tpu.dot_dimension_numbers<[1], [0], [0], [1], [0, 0, 1, 1], [], []>} : vector<32x128xf32>, vector<128x128xf32>, vector<32x128xf32> -> vector<32x128xf32>
        %39 = arith.addf %36, %38 : vector<32x128xf32>
        %c0_24 = arith.constant 0 : index
        %c0_25 = arith.constant 0 : index
        %40 = vector.load %arg9[%c0_24, %c0_25] : memref<32x128xf32, #tpu.memory_space<vmem>>, vector<32x128xf32>
        tpu.vector_store %arg9[%c0_24, %c0_25], %39 {strides = array<i32>} : memref<32x128xf32, #tpu.memory_space<vmem>>, vector<32x128xf32>,
        %c0_26 = arith.constant 0 : index
        %c0_27 = arith.constant 0 : index
        %41 = vector.load %arg7[%c0_26, %c0_27] : memref<32x1xf32, #tpu.memory_space<vmem>>, vector<32x1xf32>
        tpu.vector_store %arg7[%c0_26, %c0_27], %22 {strides = array<i32>} : memref<32x1xf32, #tpu.memory_space<vmem>>, vector<32x1xf32>,
      } else {
      }
      %c2_i32_9 = arith.constant 2 : i32
      %16 = arith.cmpi eq, %arg1, %c2_i32_9 : i32
      %17 = arith.extui %16 : i1 to i32
      %c0_i32_10 = arith.constant 0 : i32
      %18 = arith.cmpi ne, %17, %c0_i32_10 : i32
      scf.if %18 {
        %c0_11 = arith.constant 0 : index
        %c0_12 = arith.constant 0 : index
        %19 = vector.load %arg9[%c0_11, %c0_12] : memref<32x128xf32, #tpu.memory_space<vmem>>, vector<32x128xf32>
        %c0_13 = arith.constant 0 : index
        %c0_14 = arith.constant 0 : index
        %20 = vector.load %arg8[%c0_13, %c0_14] : memref<32x1xf32, #tpu.memory_space<vmem>>, vector<32x1xf32>
        %21 = vector.broadcast %20 : vector<32x1xf32> to vector<32x128xf32>
        %22 = arith.divf %19, %21 : vector<32x128xf32>
        %c0_15 = arith.constant 0 : index
        %c0_16 = arith.constant 0 : index
        %23 = vector.load %arg6[%c0_15, %c0_16] : memref<32x128xf32, #tpu.memory_space<vmem>>, vector<32x128xf32>
        tpu.vector_store %arg6[%c0_15, %c0_16], %22 {strides = array<i32>} : memref<32x128xf32, #tpu.memory_space<vmem>>, vector<32x128xf32>,
      } else {
      }
    } else {
    }
    return
  }
  func.func @transform_0(%arg0: i32, %arg1: i32, %arg2: memref<1xi32, #tpu.memory_space<smem>>) -> (i32, i32) {
    %c0 = arith.constant 0 : index
    %0 = memref.load %arg2[%c0] : memref<1xi32, #tpu.memory_space<smem>>
    %c1_i32 = arith.constant 1 : i32
    %1 = arith.subi %0, %c1_i32 : i32
    %c0_i32 = arith.constant 0 : i32
    %2 = arith.maxsi %1, %c0_i32 : i32
    %3 = arith.minsi %arg0, %2 : i32
    %c0_i32_0 = arith.constant 0 : i32
    %c0_i32_1 = arith.constant 0 : i32
    return %3, %c0_i32_0 : i32, i32
  }
  func.func @transform_1(%arg0: i32, %arg1: i32, %arg2: memref<1xi32, #tpu.memory_space<smem>>) -> (i32, i32) {
    %c0 = arith.constant 0 : index
    %0 = memref.load %arg2[%c0] : memref<1xi32, #tpu.memory_space<smem>>
    %1 = arith.cmpi slt, %arg0, %0 : i32
    %c2_i32 = arith.constant 2 : i32
    %2 = arith.select %1, %arg1, %c2_i32 : i32
    %c0_i32 = arith.constant 0 : i32
    %c0_i32_0 = arith.constant 0 : i32
    return %c0_i32, %2 : i32, i32
  }
  func.func @transform_2(%arg0: i32, %arg1: i32, %arg2: memref<1xi32, #tpu.memory_space<smem>>) -> (i32, i32) {
    %c0 = arith.constant 0 : index
    %0 = memref.load %arg2[%c0] : memref<1xi32, #tpu.memory_space<smem>>
    %1 = arith.cmpi slt, %arg0, %0 : i32
    %c2_i32 = arith.constant 2 : i32
    %2 = arith.select %1, %arg1, %c2_i32 : i32
    %c0_i32 = arith.constant 0 : i32
    %c0_i32_0 = arith.constant 0 : i32
    return %2, %c0_i32 : i32, i32
  }
  func.func @transform_3(%arg0: i32, %arg1: i32, %arg2: memref<1xi32, #tpu.memory_space<smem>>) -> (i32, i32) {
    %c0_i32 = arith.constant 0 : i32
    %c0_i32_0 = arith.constant 0 : i32
    return %arg0, %c0_i32 : i32, i32
  }
}

module attributes {stable_mosaic.version = 11 : i64} {
  func.func @_nsg_loss_kernel(%arg0: i32, %arg1: memref<16x128xf32, #tpu.memory_space<vmem>>, %arg2: memref<16x128xf32, #tpu.memory_space<vmem>>, %arg3: memref<16x640xf32, #tpu.memory_space<vmem>>, %arg4: memref<1x1xf32, #tpu.memory_space<vmem>>) attributes {dimension_semantics = [#tpu.dimension_semantics<arbitrary>], iteration_bounds = array<i64: 1>, scalar_prefetch = 0 : i64, scratch_operands = 0 : i64, tpu.core_type = #tpu.core_type<tc>, window_params = [{pipeline_mode = #tpu.pipeline_mode<synchronous>, transform_indices = @transform_0, window_bounds = array<i64: 16, 128>}, {pipeline_mode = #tpu.pipeline_mode<synchronous>, transform_indices = @transform_1, window_bounds = array<i64: 16, 128>}, {pipeline_mode = #tpu.pipeline_mode<synchronous>, transform_indices = @transform_2, window_bounds = array<i64: 16, 640>}, {pipeline_mode = #tpu.pipeline_mode<synchronous>, transform_indices = @transform_3, window_bounds = array<i64: 1, 1>}]} {
    %c0 = arith.constant 0 : index
    %c0_0 = arith.constant 0 : index
    %0 = vector.load %arg1[%c0, %c0_0] : memref<16x128xf32, #tpu.memory_space<vmem>>, vector<16x128xf32>
    %c0_1 = arith.constant 0 : index
    %c0_2 = arith.constant 0 : index
    %1 = vector.load %arg2[%c0_1, %c0_2] : memref<16x128xf32, #tpu.memory_space<vmem>>, vector<16x128xf32>
    %2 = arith.mulf %1, %0 : vector<16x128xf32>
    %cst = arith.constant dense<0.000000e+00> : vector<16xf32>
    %3 = vector.multi_reduction <add>, %2, %cst [1] : vector<16x128xf32> to vector<16xf32>
    %4 = vector.shape_cast %3 : vector<16xf32> to vector<16x1xf32>
    %cst_3 = arith.constant 0.000000e+00 : f32
    %5 = vector.broadcast %cst_3 : f32 to vector<16x1xf32>
    %c0_4 = arith.constant 0 : index
    %c0_5 = arith.constant 0 : index
    %6 = vector.load %arg3[%c0_4, %c0_5] : memref<16x640xf32, #tpu.memory_space<vmem>>, vector<16x128xf32>
    %7 = arith.mulf %6, %0 : vector<16x128xf32>
    %cst_6 = arith.constant dense<0.000000e+00> : vector<16xf32>
    %8 = vector.multi_reduction <add>, %7, %cst_6 [1] : vector<16x128xf32> to vector<16xf32>
    %9 = vector.shape_cast %8 : vector<16xf32> to vector<16x1xf32>
    %10 = arith.addf %5, %9 : vector<16x1xf32>
    %c0_7 = arith.constant 0 : index
    %c128 = arith.constant 128 : index
    %11 = vector.load %arg3[%c0_7, %c128] : memref<16x640xf32, #tpu.memory_space<vmem>>, vector<16x128xf32>
    %12 = arith.mulf %11, %0 : vector<16x128xf32>
    %cst_8 = arith.constant dense<0.000000e+00> : vector<16xf32>
    %13 = vector.multi_reduction <add>, %12, %cst_8 [1] : vector<16x128xf32> to vector<16xf32>
    %14 = vector.shape_cast %13 : vector<16xf32> to vector<16x1xf32>
    %15 = arith.addf %10, %14 : vector<16x1xf32>
    %c0_9 = arith.constant 0 : index
    %c256 = arith.constant 256 : index
    %16 = vector.load %arg3[%c0_9, %c256] : memref<16x640xf32, #tpu.memory_space<vmem>>, vector<16x128xf32>
    %17 = arith.mulf %16, %0 : vector<16x128xf32>
    %cst_10 = arith.constant dense<0.000000e+00> : vector<16xf32>
    %18 = vector.multi_reduction <add>, %17, %cst_10 [1] : vector<16x128xf32> to vector<16xf32>
    %19 = vector.shape_cast %18 : vector<16xf32> to vector<16x1xf32>
    %20 = arith.addf %15, %19 : vector<16x1xf32>
    %c0_11 = arith.constant 0 : index
    %c384 = arith.constant 384 : index
    %21 = vector.load %arg3[%c0_11, %c384] : memref<16x640xf32, #tpu.memory_space<vmem>>, vector<16x128xf32>
    %22 = arith.mulf %21, %0 : vector<16x128xf32>
    %cst_12 = arith.constant dense<0.000000e+00> : vector<16xf32>
    %23 = vector.multi_reduction <add>, %22, %cst_12 [1] : vector<16x128xf32> to vector<16xf32>
    %24 = vector.shape_cast %23 : vector<16xf32> to vector<16x1xf32>
    %25 = arith.addf %20, %24 : vector<16x1xf32>
    %c0_13 = arith.constant 0 : index
    %c512 = arith.constant 512 : index
    %26 = vector.load %arg3[%c0_13, %c512] : memref<16x640xf32, #tpu.memory_space<vmem>>, vector<16x128xf32>
    %27 = arith.mulf %26, %0 : vector<16x128xf32>
    %cst_14 = arith.constant dense<0.000000e+00> : vector<16xf32>
    %28 = vector.multi_reduction <add>, %27, %cst_14 [1] : vector<16x128xf32> to vector<16xf32>
    %29 = vector.shape_cast %28 : vector<16xf32> to vector<16x1xf32>
    %30 = arith.addf %25, %29 : vector<16x1xf32>
    %cst_15 = arith.constant 0.000000e+00 : f32
    %31 = vector.broadcast %cst_15 : f32 to vector<16x1xf32>
    %32 = arith.minimumf %4, %31 : vector<16x1xf32>
    %33 = math.absf %4 : vector<16x1xf32>
    %cst_16 = arith.constant 0.000000e+00 : f32
    %34 = vector.broadcast %cst_16 : f32 to vector<16x1xf32>
    %35 = arith.subf %34, %33 : vector<16x1xf32>
    %36 = math.exp %35 : vector<16x1xf32>
    %cst_17 = arith.constant 1.000000e+00 : f32
    %37 = vector.broadcast %cst_17 : f32 to vector<16x1xf32>
    %38 = arith.addf %37, %36 : vector<16x1xf32>
    %39 = math.log %38 : vector<16x1xf32>
    %40 = arith.subf %32, %39 : vector<16x1xf32>
    %cst_18 = arith.constant 0.000000e+00 : f32
    %41 = vector.broadcast %cst_18 : f32 to vector<16x1xf32>
    %42 = arith.subf %41, %40 : vector<16x1xf32>
    %cst_19 = arith.constant 0.000000e+00 : f32
    %43 = vector.broadcast %cst_19 : f32 to vector<16x1xf32>
    %44 = arith.subf %43, %30 : vector<16x1xf32>
    %cst_20 = arith.constant 0.000000e+00 : f32
    %45 = vector.broadcast %cst_20 : f32 to vector<16x1xf32>
    %46 = arith.minimumf %44, %45 : vector<16x1xf32>
    %47 = math.absf %44 : vector<16x1xf32>
    %cst_21 = arith.constant 0.000000e+00 : f32
    %48 = vector.broadcast %cst_21 : f32 to vector<16x1xf32>
    %49 = arith.subf %48, %47 : vector<16x1xf32>
    %50 = math.exp %49 : vector<16x1xf32>
    %cst_22 = arith.constant 1.000000e+00 : f32
    %51 = vector.broadcast %cst_22 : f32 to vector<16x1xf32>
    %52 = arith.addf %51, %50 : vector<16x1xf32>
    %53 = math.log %52 : vector<16x1xf32>
    %54 = arith.subf %46, %53 : vector<16x1xf32>
    %55 = arith.subf %42, %54 : vector<16x1xf32>
    %56 = tpu.iota {dimensions = array<i32: 0>} : vector<16x1xi32>
    %c10_i32 = arith.constant 10 : i32
    %57 = vector.broadcast %c10_i32 : i32 to vector<16x1xi32>
    %58 = arith.cmpi slt, %56, %57 : vector<16x1xi32>
    %cst_23 = arith.constant 0.000000e+00 : f32
    %59 = vector.broadcast %cst_23 : f32 to vector<16x1xf32>
    %60 = arith.select %58, %55, %59 : vector<16x1xi1>, vector<16x1xf32>
    %cst_24 = arith.constant dense<0.000000e+00> : vector<1xf32>
    %61 = vector.multi_reduction <add>, %60, %cst_24 [0] : vector<16x1xf32> to vector<1xf32>
    %62 = vector.shape_cast %61 : vector<1xf32> to vector<1x1xf32>
    %cst_25 = arith.constant 1.000000e-01 : f32
    %63 = vector.broadcast %cst_25 : f32 to vector<1x1xf32>
    %64 = arith.mulf %62, %63 : vector<1x1xf32>
    %c0_26 = arith.constant 0 : index
    %c0_27 = arith.constant 0 : index
    %65 = vector.load %arg4[%c0_26, %c0_27] : memref<1x1xf32, #tpu.memory_space<vmem>>, vector<1x1xf32>
    tpu.vector_store %arg4[%c0_26, %c0_27], %64 {strides = array<i32>} : memref<1x1xf32, #tpu.memory_space<vmem>>, vector<1x1xf32>,
    return
  }
  func.func @transform_0(%arg0: i32) -> (i32, i32) {
    %c0_i32 = arith.constant 0 : i32
    %c0_i32_0 = arith.constant 0 : i32
    %c0_i32_1 = arith.constant 0 : i32
    return %c0_i32, %c0_i32_0 : i32, i32
  }
  func.func @transform_1(%arg0: i32) -> (i32, i32) {
    %c0_i32 = arith.constant 0 : i32
    %c0_i32_0 = arith.constant 0 : i32
    %c0_i32_1 = arith.constant 0 : i32
    return %c0_i32, %c0_i32_0 : i32, i32
  }
  func.func @transform_2(%arg0: i32) -> (i32, i32) {
    %c0_i32 = arith.constant 0 : i32
    %c0_i32_0 = arith.constant 0 : i32
    %c0_i32_1 = arith.constant 0 : i32
    return %c0_i32, %c0_i32_0 : i32, i32
  }
  func.func @transform_3(%arg0: i32) -> (i32, i32) {
    %c0_i32 = arith.constant 0 : i32
    %c0_i32_0 = arith.constant 0 : i32
    %c0_i32_1 = arith.constant 0 : i32
    return %c0_i32, %c0_i32_0 : i32, i32
  }
}

</mosaic_0001>

<bundles_post_ra>
// kernel: word2vec_forward.3
= control target key start
LH: loop header
LB: loop body
LE: loop exit
PB: predicated region body
PF: predicated region fallthrough
CT: control target
= control target key end

     0   :  { %s1569_s0 = inlined_call_operand.<no memory space> [shape: s32[1], index: 0, kind: input, shape index: {}]   ;;  %s1570_s1 = inlined_call_operand.vmem [shape: f32[16,128], index: 1, kind: input, shape index: {}]   ;;  %s1571_s2 = inlined_call_operand.vmem [shape: f32[128,384], index: 2, kind: input, shape index: {}]   ;;  %s1572_s3 = inlined_call_operand.vmem [shape: f32[384,128], index: 3, kind: input, shape index: {}]   ;;  %s1573_s4 = inlined_call_operand.vmem [shape: f32[16,128], index: 4, kind: output, shape index: {}]  }
   0x1   :  { %9 = sst [smem:[#allocation6]] %s1569_s0 }
   0x2   :  { %s1391_s17 = smov 0   ;;  %s1393_s18 = smov 0  }
   0x3   :  { %s1395_s19 = smov 0   ;;  %s1397_s20 = smov 0  }
   0x4   :  { %s1399_s21 = smov 0  }
   0x5 LB: > { %s24_s0 = sadd.s32 1, %s1352_s20  ;;  %s69_s22 = sld [smem:[#allocation6]]  ;;  %s1356_s21 = sphi %s1399_s21, %s15_s21   ;;  %s1352_s20 = sphi %s1397_s20, %s1577_s20   ;;  %s1348_s19 = sphi %s1395_s19, %s1576_s19   ;;  %s1344_s18 = sphi %s1393_s18, %s1575_s18   ;;  %s1340_s17 = sphi %s1391_s17, %s1574_s17  }
   0x6   : > { %p25_p0 = scmp.ge.s32.totalorder %s24_s0, 3  ;;  %p85_p1 = scmp.ne.s32.totalorder %s1344_s18, %s1340_s17 }
   0x7   : > { %p86_p2 = scmp.eq.s32.totalorder %s1356_s21, 0  ;;  %s78_s26 = sadd.s32 1, %s1344_s18 }
   0x8   : > { %s1579_s0 = smov (%p25_p0, %s24_s0), 0  ;;  %p960_p6 = scmp.ge.s32.totalorder %s1356_s21, 3 }
   0x9   : > { %p87_p3 = por %p86_p2, %p85_p1 }
   0xb   : > { %p955_p4 = scmp.gt.s32.totalorder %s69_s22, 0 }
   0xd   : > { %s71_s23 = scalar_select %p955_p4, %s1352_s20, 2 }
   0xe   : > { %s74_s24 = scalar_select %p955_p4, %s1579_s0, 2 }
   0xf   : > { %190 = sbr.rel (%p960_p6) target bundleno = 43 (0x2b), region = 20 }
  0x10   : > { %s75_s25 = ssub.s32 %s71_s23, %s74_s24 }
  0x11   : > { %p76_p5 = scmp.eq.s32.totalorder %s75_s25, 0 }
  0x13   : > { %s1426_s27 = scalar_select %p76_p5, %s1344_s18, %s78_s26  }
  0x16   : > { %193 = sbr.rel (!%p87_p3) target bundleno = 43 (0x2b), region = 24  ;;  %s198_s28 = sld [smem:[#allocation6]] (%p87_p3) }
  0x17   : > { %s195_s29 = sand.u32 (%p87_p3), 1, %s1344_s18  }
  0x18   : > { %s961_s30 = sshll.u32 (%p87_p3), %s195_s29, 7 }
  0x19   : > { %s197_s10 = scalar_lea.vmem (%p87_p3), [#allocation7], %s961_s30 }
  0x1c   : > { %p962_p7 = scmp.gt.s32.totalorder (%p87_p3), %s198_s28, 0 }
  0x1e   : > { %s200_s5 = scalar_select %p962_p7, %s1352_s20, 2 }
  0x20   : > { %s963_s6 = sshll.u32 %s200_s5, 3 }
  0x21   : > { %s1434_s9 = scalar_lea.vmem %s1571_s2, %s963_s6 }
  0x22   : > { %v260_v0 = vld [vmem:[%s1434_s9] sm:$0xff]  ;;  %v262_v1 = vld [vmem:[%s1434_s9 + $0x18] sm:$0xff]  ;;  %v264_v2 = vld [vmem:[%s1434_s9 + $0x30] sm:$0xff] }
  0x23   : > { %261 = vst [vmem:[%s197_s10] sm:$0xff] %v260_v0  ;;  %263 = vst [vmem:[%s197_s10 + $0x8] sm:$0xff] %v262_v1  ;;  %v266_v3 = vld [vmem:[%s1434_s9 + $0x48] sm:$0xff]  ;;  %v268_v4 = vld [vmem:[%s1434_s9 + $0x60] sm:$0xff] }
  0x24   : > { %265 = vst [vmem:[%s197_s10 + $0x10] sm:$0xff] %v264_v2  ;;  %v270_v5 = vld [vmem:[%s1434_s9 + $0x78] sm:$0xff]  ;;  %267 = vst [vmem:[%s197_s10 + $0x18] sm:$0xff] %v266_v3  ;;  %v272_v6 = vld [vmem:[%s1434_s9 + $0x90] sm:$0xff] }
  0x25   : > { %269 = vst [vmem:[%s197_s10 + $0x20] sm:$0xff] %v268_v4  ;;  %271 = vst [vmem:[%s197_s10 + $0x28] sm:$0xff] %v270_v5  ;;  %v274_v7 = vld [vmem:[%s1434_s9 + $0xa8] sm:$0xff]  ;;  %v276_v8 = vld [vmem:[%s1434_s9 + $0xc0] sm:$0xff] }
  0x26   : > { %273 = vst [vmem:[%s197_s10 + $0x30] sm:$0xff] %v272_v6  ;;  %275 = vst [vmem:[%s197_s10 + $0x38] sm:$0xff] %v274_v7  ;;  %v278_v9 = vld [vmem:[%s1434_s9 + $0xd8] sm:$0xff]  ;;  %v280_v10 = vld [vmem:[%s1434_s9 + $0xf0] sm:$0xff] }
  0x27   : > { %277 = vst [vmem:[%s197_s10 + $0x40] sm:$0xff] %v276_v8  ;;  %v282_v11 = vld [vmem:[%s1434_s9 + $0x108] sm:$0xff]  ;;  %279 = vst [vmem:[%s197_s10 + $0x48] sm:$0xff] %v278_v9  ;;  %v284_v12 = vld [vmem:[%s1434_s9 + $0x120] sm:$0xff] }
  0x28   : > { %281 = vst [vmem:[%s197_s10 + $0x50] sm:$0xff] %v280_v10  ;;  %283 = vst [vmem:[%s197_s10 + $0x58] sm:$0xff] %v282_v11  ;;  %v286_v13 = vld [vmem:[%s1434_s9 + $0x138] sm:$0xff]  ;;  %v288_v14 = vld [vmem:[%s1434_s9 + $0x150] sm:$0xff] }
  0x29   : > { %285 = vst [vmem:[%s197_s10 + $0x60] sm:$0xff] %v284_v12  ;;  %287 = vst [vmem:[%s197_s10 + $0x68] sm:$0xff] %v286_v13  ;;  %v290_v15 = vld [vmem:[%s1434_s9 + $0x168] sm:$0xff] }
  0x2a   : > { %289 = vst [vmem:[%s197_s10 + $0x70] sm:$0xff] %v288_v14  ;;  %291 = vst [vmem:[%s197_s10 + $0x78] sm:$0xff] %v290_v15 }
  0x2b PF: > { %p964_p8 = scmp.ge.s32.totalorder %s1356_s21, 1  ;;  %p311_p9 = scmp.lt.s32.totalorder %s1356_s21, 4 }
  0x2d   : > { %p312_p10 = pnand %p964_p8, %p311_p9 }
  0x2e   : > { %s318_s11 = sand.u32 (!%p312_p10), 1, %s1340_s17   ;;  %s360_s12 = sld [smem:[#allocation6]] (!%p312_p10) }
  0x2f   : > { %315 = sbr.rel (%p312_p10) target bundleno = 1484 (0x5cc), region = 66  ;;  %s965_s13 = sshll.u32 (!%p312_p10), %s318_s11, 7 }
  0x30   : > { %s1466_s5 = scalar_lea.vmem (!%p312_p10), [#allocation7], %s965_s13 }
  0x34   : > { %s966_s14 = sadd.s32 (!%p312_p10), 4294967295, %s360_s12  ;;  %p970_p11 = scmp.gt.s32.totalorder (!%p312_p10), %s360_s12, 0 }
  0x35   : > { %p362_p12 = scmp.gt.s32.totalorder (!%p312_p10), %s966_s14, 0  ;;  %p974_p1 = scmp.le.s32.totalorder (!%p312_p10), %s360_s12, 0 }
  0x36   : > { %s383_s15 = scalar_select %p970_p11, %s1348_s19, 2 }
  0x37   : > { %s1581_s14 = smov (!%p362_p12, %s966_s14), 0  ;;  %p975_p2 = scmp.ne.s32.totalorder (!%p974_p1), %s1348_s19, 0 }
  0x38   : > { %s971_s16 = sshll.u32 %s383_s15, 4  ;;  %s1583_s14 = smov (%p362_p12, %s1581_s14), 0 }
  0x39   : > { %p385_p13 = scmp.lt.s32.totalorder %s971_s16, 47  ;;  %s968_s22 = sshll.u32 %s1583_s14, 1 }
  0x3a   : > { %p367_p0 = scmp.lt.s32.totalorder %s968_s22, 1  ;;  %403 = sbr.rel (%p974_p1) target bundleno = 1484 (0x5cc), region = 74 }
  0x3b   : > { %s1585_s16 = smov (!%p385_p13, %s971_s16), 47 }
  0x3c   : > { %s1587_s22 = smov (!%p367_p0, %s968_s22), 1  ;;  %s972_s23 = sshll.u32 %s1585_s16, 3 }
  0x3d   : > { %s969_s24 = sshll.u32 %s1587_s22, 3  ;;  %s1459_s17 = scalar_lea.vmem %s1572_s3, %s972_s23 }
  0x3e   : > { %s1464_s30 = scalar_lea.vmem %s1570_s1, %s969_s24 }
  0x41   : > { %407 = sbr.rel (%p975_p2) target bundleno = 72 (0x48), region = 78  ;;  %vm408_vm0 = vcmask (!%p975_p2), 7168   ;;  %v1358_v16 = vmov (!%p975_p2), -inf   ;;  %v1359_v17 = vmov (!%p975_p2), 0.0  }
  0x42   : > { %409 = vst.msk [vmem:[#allocation2] sm:$0xff] (!%p975_p2), %vm408_vm0, %v1358_v16  ;;  %410 = vst.msk [vmem:[#allocation2 + $0x8] sm:$0xff] (!%p975_p2), %vm408_vm0, %v1358_v16 }
  0x43   : > { %411 = vst.msk [vmem:[#allocation3] sm:$0xff] (!%p975_p2), %vm408_vm0, %v1359_v17  ;;  %412 = vst.msk [vmem:[#allocation3 + $0x8] sm:$0xff] (!%p975_p2), %vm408_vm0, %v1359_v17 }
  0x44   : > { %413 = vst [vmem:[#allocation4] sm:$0xff] (!%p975_p2), %v1359_v17  ;;  %414 = vst [vmem:[#allocation4 + $0x8] sm:$0xff] (!%p975_p2), %v1359_v17 }
  0x48 PF: > { %v417_v18 = vld [vmem:[%s1466_s5] sm:$0xff]  ;;  %v418_v19 = vld [vmem:[%s1466_s5 + $0x8] sm:$0xff]  ;;  %v419_v20 = vld [vmem:[%s1466_s5 + $0x10] sm:$0xff]  ;;  %p976_p3 = scmp.ne.s32.totalorder %s1348_s19, 2 }
  0x49   : > { %v1152_v21 = vpack.c.bf16 %v418_v19, %v417_v18  ;;  %v420_v22 = vld [vmem:[%s1466_s5 + $0x18] sm:$0xff]  ;;  %v421_v24 = vld [vmem:[%s1466_s5 + $0x20] sm:$0xff]  ;;  %v422_v25 = vld [vmem:[%s1466_s5 + $0x28] sm:$0xff]  ;;  %s977_s6 = sshll.u32 (!%p976_p3), %s1348_s19, 7  ;;  %v513_v46 = vlaneseq (!%p976_p3)  ;;  %v1360_v52 = vmov (!%p976_p3), 0   ;;  %vm560_vm2 = vcmask (!%p976_p3), 7168  }
  0x4a   : > { %v1156_v23 = vpack.c.bf16 %v420_v22, %v419_v20  ;;  %v1160_v26 = vpack.c.bf16 %v422_v25, %v421_v24  ;;  %v415_v27 = vld [vmem:[%s1464_s30] sm:$0xff]  ;;  %v424_v29 = vld [vmem:[%s1466_s5 + $0x38] sm:$0xff]  ;;  %v425_v31 = vld [vmem:[%s1466_s5 + $0x40] sm:$0xff]  ;;  %v515_v47 = vstv (!%p976_p3), %s977_s6  ;;  %1293 = vset.pattern.permute.xlu1 (!%p976_p3), %v1360_v52  ;;  %1294 = vset.pattern.permute.xlu0 (!%p976_p3), %v1360_v52 }
  0x4b   : > { %1153 = vmatprep.subr.bf16.mxu0 %v1152_v21  ;;  %v423_v28 = vld [vmem:[%s1466_s5 + $0x30] sm:$0xff]  ;;  %1079 = vmatprep.mubr.f32.mxu0 %v415_v27  ;;  %v426_v32 = vld [vmem:[%s1466_s5 + $0x48] sm:$0xff]  ;;  %v428_v35 = vld [vmem:[%s1466_s5 + $0x58] sm:$0xff]  ;;  %v514_v48 = vand.u32 (!%p976_p3), 127, %v513_v46 }
  0x4c   : > { %1155 = vmatpush3.bf16.msra.mxu0 %v1152_v21  ;;  %v1164_v30 = vpack.c.bf16 %v424_v29, %v423_v28  ;;  %v1168_v33 = vpack.c.bf16 %v426_v32, %v425_v31  ;;  %v427_v34 = vld [vmem:[%s1466_s5 + $0x50] sm:$0xff]  ;;  %v429_v37 = vld [vmem:[%s1466_s5 + $0x60] sm:$0xff]  ;;  %v430_v38 = vld [vmem:[%s1466_s5 + $0x68] sm:$0xff] }
  0x4d   : > { %1157 = vmatprep.subr.bf16.mxu0 %v1156_v23  ;;  %v1172_v36 = vpack.c.bf16 %v428_v35, %v427_v34  ;;  %v1176_v39 = vpack.c.bf16 %v430_v38, %v429_v37  ;;  %v431_v40 = vld [vmem:[%s1466_s5 + $0x70] sm:$0xff]  ;;  %v432_v41 = vld [vmem:[%s1466_s5 + $0x78] sm:$0xff]  ;;  %v516_v49 = vadd.s32 (!%p976_p3), %v515_v47, %v514_v48  ;;  %v579_v55 = vld [vmem:[%s1459_s17 + $0x10] sm:$0xff] (!%p976_p3) }
  0x4e   : > { %v1180_v42 = vpack.c.bf16 %v432_v41, %v431_v40  ;;  %v416_v43 = vld [vmem:[%s1464_s30 + $0x8] sm:$0xff]  ;;  %v577_v53 = vld [vmem:[%s1459_s17] sm:$0xff] (!%p976_p3)  ;;  %v580_v57 = vld [vmem:[%s1459_s17 + $0x18] sm:$0xff] (!%p976_p3) }
  0x4f   : > { %vm517_vm1 = vcmp.lt.s32.totalorder (!%p976_p3), %v516_v49, 320  ;;  %v578_v54 = vld [vmem:[%s1459_s17 + $0x8] sm:$0xff] (!%p976_p3)  ;;  %v1188_v58 = vpack.c.bf16 (!%p976_p3), %v580_v57, %v579_v55  ;;  %v581_v59 = vld [vmem:[%s1459_s17 + $0x20] sm:$0xff] (!%p976_p3)  ;;  %v583_v62 = vld [vmem:[%s1459_s17 + $0x30] sm:$0xff] (!%p976_p3) }
  0x50   : > { %1159 = vmatpush3.bf16.msra.mxu0 %v1156_v23  ;;  %v1184_v56 = vpack.c.bf16 (!%p976_p3), %v578_v54, %v577_v53  ;;  %v582_v60 = vld [vmem:[%s1459_s17 + $0x28] sm:$0xff] (!%p976_p3)  ;;  %v584_v63 = vld [vmem:[%s1459_s17 + $0x38] sm:$0xff] (!%p976_p3)  ;;  %v520_v1 = vld [vmem:[#allocation2] sm:$0xff] (!%p976_p3) }
  0x51   : > { %1161 = vmatprep.subr.bf16.mxu0 %v1160_v26  ;;  %v1192_v61 = vpack.c.bf16 (!%p976_p3), %v582_v60, %v581_v59  ;;  %v1196_v0 = vpack.c.bf16 (!%p976_p3), %v584_v63, %v583_v62  ;;  %v521_v4 = vld [vmem:[#allocation2 + $0x8] sm:$0xff] (!%p976_p3)  ;;  %v585_v6 = vld [vmem:[%s1459_s17 + $0x40] sm:$0xff] (!%p976_p3)  ;;  %v587_v12 = vld [vmem:[%s1459_s17 + $0x50] sm:$0xff] (!%p976_p3) }
  0x52   : > { %v586_v7 = vld [vmem:[%s1459_s17 + $0x48] sm:$0xff] (!%p976_p3)  ;;  %v588_v13 = vld [vmem:[%s1459_s17 + $0x58] sm:$0xff] (!%p976_p3)  ;;  %v589_v15 = vld [vmem:[%s1459_s17 + $0x60] sm:$0xff] (!%p976_p3) }
  0x53   : > { %v1200_v9 = vpack.c.bf16 (!%p976_p3), %v586_v7, %v585_v6  ;;  %v1204_v14 = vpack.c.bf16 (!%p976_p3), %v588_v13, %v587_v12  ;;  %v590_v16 = vld [vmem:[%s1459_s17 + $0x68] sm:$0xff] (!%p976_p3)  ;;  %v591_v17 = vld [vmem:[%s1459_s17 + $0x70] sm:$0xff] (!%p976_p3)  ;;  %v592_v19 = vld [vmem:[%s1459_s17 + $0x78] sm:$0xff] (!%p976_p3) }
  0x54   : > { %1163 = vmatpush3.bf16.msra.mxu0 %v1160_v26  ;;  %v1208_v18 = vpack.c.bf16 (!%p976_p3), %v590_v16, %v589_v15  ;;  %v1212_v20 = vpack.c.bf16 (!%p976_p3), %v592_v19, %v591_v17  ;;  %v564_v41 = vld [vmem:[#allocation4 + $0x8] sm:$0xff] (!%p976_p3) }
  0x55   : > { %1165 = vmatprep.subr.bf16.mxu0 %v1164_v30 }
  0x58   : > { %1167 = vmatpush3.bf16.msra.mxu0 %v1164_v30 }
  0x59   : > { %1169 = vmatprep.subr.bf16.mxu0 %v1168_v33 }
  0x5c   : > { %1171 = vmatpush3.bf16.msra.mxu0 %v1168_v33  ;;  %v550_v33 = vld [vmem:[#allocation3] sm:$0xff] (!%p976_p3) }
  0x5d   : > { %1173 = vmatprep.subr.bf16.mxu0 %v1172_v36 }
  0x60   : > { %1175 = vmatpush3.bf16.msra.mxu0 %v1172_v36  ;;  %v551_v36 = vld [vmem:[#allocation3 + $0x8] sm:$0xff] (!%p976_p3) }
  0x61   : > { %1177 = vmatprep.subr.bf16.mxu0 %v1176_v39 }
  0x64   : > { %1179 = vmatpush3.bf16.msra.mxu0 %v1176_v39 }
  0x65   : > { %1181 = vmatprep.subr.bf16.mxu0 %v1180_v42 }
  0x68   : > { %1183 = vmatpush3.bf16.msra.mxu0 %v1180_v42 }
  0x69   : > { %1185 = vmatprep.subr.bf16.mxu0 (!%p976_p3), %v1184_v56 }
  0x6b   : > { %1080 = vmatmul.mubr.f32.vlgmr.msra.gmra.mrb[0].mxu0 %v416_v43  ;;  %v563_v43 = vld [vmem:[#allocation4] sm:$0xff] (!%p976_p3) }
  0x6c   : > { %1187 = vmatpush3.bf16.msra.mxu0 (!%p976_p3), %v1184_v56 }
  0x6d   : > { %1189 = vmatprep.subr.bf16.mxu0 (!%p976_p3), %v1188_v58 }
  0x70   : > { %1191 = vmatpush3.bf16.msra.mxu0 (!%p976_p3), %v1188_v58 }
  0x71   : > { %1193 = vmatprep.subr.bf16.mxu0 (!%p976_p3), %v1192_v61 }
  0x74   : > { %1195 = vmatpush3.bf16.msra.mxu0 (!%p976_p3), %v1192_v61 }
  0x75   : > { %1197 = vmatprep.subr.bf16.mxu0 (!%p976_p3), %v1196_v0 }
  0x78   : > { %1199 = vmatpush3.bf16.msra.mxu0 (!%p976_p3), %v1196_v0 }
  0x79   : > { %1201 = vmatprep.subr.bf16.mxu0 (!%p976_p3), %v1200_v9 }
  0x7c   : > { %1203 = vmatpush3.bf16.msra.mxu0 (!%p976_p3), %v1200_v9 }
  0x7d   : > { %1205 = vmatprep.subr.bf16.mxu0 (!%p976_p3), %v1204_v14 }
  0x80   : > { %1207 = vmatpush3.bf16.msra.mxu0 (!%p976_p3), %v1204_v14 }
  0x81   : > { %1209 = vmatprep.subr.bf16.mxu0 (!%p976_p3), %v1208_v18 }
  0x84   : > { %1211 = vmatpush3.bf16.msra.mxu0 (!%p976_p3), %v1208_v18 }
  0x85   : > { %1213 = vmatprep.subr.bf16.mxu0 (!%p976_p3), %v1212_v20 }
  0x88   : > { %1215 = vmatpush3.bf16.msra.mxu0 (!%p976_p3), %v1212_v20 }
 0x139   : > { %511 = sbr.rel (%p976_p3) target bundleno = 828 (0x33c), region = 82 }
 0x13e   : > { %v1487_v44 = vpop.f32.mrb[0].mxu0 }
 0x13f   : > { %v1489_v45 = vpop.f32.mrb[1].mxu0  ;;  %v1497_v51 = vsel (!%p976_p3), %vm517_vm1, %v1487_v44, -inf }
 0x140   : > { %v518_v50 = vsel %vm517_vm1, %v1489_v45, -inf }
 0x141   : > { %522 = vmax.xlane.f32.xlu0 %v518_v50 }
 0x145   : > { %524 = vmax.xlane.f32.xlu0 %v1497_v51 }
 0x1ce   : > { %v523_v2 = vpop.xlane.xlu0 %522 }
 0x1cf   : > { %v526_v3 = vmax.f32 %v520_v1, %v523_v2 }
 0x1d1   : > { %v528_v5 = vsub.f32 %v520_v1, %v526_v3  ;;  %672 = vst.msk [vmem:[#allocation2] sm:$0xff] %vm560_vm2, %v526_v3  ;;  %536 = vperm.xlu1 %1293, %v526_v3  }
 0x1d2   : > { %v525_v8 = vpop.xlane.xlu0 %524 }
 0x1d3   : > { %v527_v10 = vmax.f32 %v521_v4, %v525_v8  ;;  %v530_v30 = vmul.f32 1.442695, %v528_v5 }
 0x1d5   : > { %v529_v11 = vsub.f32 %v521_v4, %v527_v10  ;;  %673 = vst.msk [vmem:[#allocation2 + $0x8] sm:$0xff] %vm560_vm2, %v527_v10  ;;  %541 = vperm.xlu1 %1293, %v527_v10  }
 0x1d7   : > { %v532_v29 = vmul.f32 1.442695, %v529_v11 }
 0x250   : > { %v537_v21 = vpop.permute.xlu1 %536 }
 0x251   : > { %v544_v22 = vsub.f32 %v518_v50, %v537_v21 }
 0x253   : > { %v546_v23 = vmul.f32 1.442695, %v544_v22 }
 0x254   : > { %v542_v24 = vpop.permute.xlu1 %541 }
 0x255   : > { %1295 = vpow2.f32 %v546_v23  ;;  %v545_v25 = vsub.f32 %v1497_v51, %v542_v24 }
 0x257   : > { %v548_v26 = vmul.f32 1.442695, %v545_v25 }
 0x259   : > { %1297 = vpow2.f32 %v548_v26 }
 0x25a   : > { %1299 = vpow2.f32 %v532_v29 }
 0x25b   : > { %1301 = vpow2.f32 %v530_v30 }
 0x25f   : > { %v1296_v27 = vpop.eup %1295 }
 0x260   : > { %554 = vadd.xlane.f32.xlu0 %v1296_v27  ;;  %1114 = vmatprep.mubr.f32.mxu0 %v1296_v27 }
 0x263   : > { %v1298_v28 = vpop.eup %1297 }
 0x264   : > { %556 = vadd.xlane.f32.xlu1 %v1298_v28  ;;  %1115 = vmatmul.mubr.f32.vlgmr.msra.gmra.mrb[0].mxu0 %v1298_v28  ;;  %v1300_v31 = vpop.eup %1299 }
 0x265   : > { %v1302_v32 = vpop.eup %1301  ;;  %v553_v38 = vmul.f32 %v1300_v31, %v551_v36 }
 0x266   : > { %v552_v34 = vmul.f32 %v1302_v32, %v550_v33 }
 0x275   : > { %572 = vperm.xlu1 %1293, %v1300_v31  }
 0x276   : > { %567 = vperm.xlu0 %1294, %v1302_v32  }
 0x2ed   : > { %v555_v35 = vpop.xlane.xlu0 %554 }
 0x2ee   : > { %v558_v37 = vadd.f32 %v555_v35, %v552_v34 }
 0x2f0   : > { %561 = vst.msk [vmem:[#allocation3] sm:$0xff] %vm560_vm2, %v558_v37 }
 0x2f1   : > { %v557_v39 = vpop.xlane.xlu1 %556 }
 0x2f2   : > { %v559_v40 = vadd.f32 %v557_v39, %v553_v38 }
 0x2f4   : > { %562 = vst.msk [vmem:[#allocation3 + $0x8] sm:$0xff] %vm560_vm2, %v559_v40 }
 0x2f5   : > { %v573_v42 = vpop.permute.xlu1 %572  ;;  %v568_v46 = vpop.permute.xlu0 %567 }
 0x2f6   : > { %v576_v47 = vmul.f32 %v573_v42, %v564_v41  ;;  %v575_v48 = vmul.f32 %v568_v46, %v563_v43 }
 0x337   : > { %v1116_v49 = vpop.f32.mrb[0].mxu0 }
 0x338   : > { %v669_v50 = vadd.f32 %v1116_v49, %v576_v47  ;;  %v659_v51 = vpop.f32.mrb[1].mxu0 }
 0x339   : > { %v668_v52 = vadd.f32 %v659_v51, %v575_v48 }
 0x33a   : > { %671 = vst [vmem:[#allocation4 + $0x8] sm:$0xff] %v669_v50 }
 0x33b   : > { %670 = vst [vmem:[#allocation4] sm:$0xff] %v668_v52 }
 0x33c PF: > { %p978_p4 = scmp.eq.s32.totalorder %s1348_s19, 2 }
 0x33d   : > { %680 = vmax.xlane.f32.xlu0 (!%p978_p4), %v1489_v45  ;;  %v1361_v53 = vmov (!%p978_p4), 0   ;;  %v735_v54 = vld [vmem:[%s1459_s17] sm:$0xff] (!%p978_p4)  ;;  %v736_v55 = vld [vmem:[%s1459_s17 + $0x8] sm:$0xff] (!%p978_p4)  ;;  %v737_v56 = vld [vmem:[%s1459_s17 + $0x10] sm:$0xff] (!%p978_p4)  ;;  %vm718_vm3 = vcmask (!%p978_p4), 7168  }
 0x33e   : > { %677 = sbr.rel (%p978_p4) target bundleno = 1336 (0x538), region = 86  ;;  %1303 = vset.pattern.permute.xlu1 (!%p978_p4), %v1361_v53  ;;  %1304 = vset.pattern.permute.xlu0 (!%p978_p4), %v1361_v53  ;;  %v1216_v57 = vpack.c.bf16 (!%p978_p4), %v736_v55, %v735_v54  ;;  %v738_v58 = vld [vmem:[%s1459_s17 + $0x18] sm:$0xff] (!%p978_p4)  ;;  %v739_v60 = vld [vmem:[%s1459_s17 + $0x20] sm:$0xff] (!%p978_p4)  ;;  %v740_v61 = vld [vmem:[%s1459_s17 + $0x28] sm:$0xff] (!%p978_p4) }
 0x33f   : > { %v1220_v59 = vpack.c.bf16 (!%p978_p4), %v738_v58, %v737_v56  ;;  %v1224_v62 = vpack.c.bf16 (!%p978_p4), %v740_v61, %v739_v60  ;;  %v741_v63 = vld [vmem:[%s1459_s17 + $0x30] sm:$0xff] (!%p978_p4)  ;;  %v742_v0 = vld [vmem:[%s1459_s17 + $0x38] sm:$0xff] (!%p978_p4)  ;;  %v678_v2 = vld [vmem:[#allocation2] sm:$0xff] (!%p978_p4) }
 0x340   : > { %1217 = vmatprep.subr.bf16.mxu0 (!%p978_p4), %v1216_v57  ;;  %v1228_v1 = vpack.c.bf16 (!%p978_p4), %v742_v0, %v741_v63  ;;  %v679_v5 = vld [vmem:[#allocation2 + $0x8] sm:$0xff] (!%p978_p4)  ;;  %v743_v7 = vld [vmem:[%s1459_s17 + $0x40] sm:$0xff] (!%p978_p4)  ;;  %v745_v13 = vld [vmem:[%s1459_s17 + $0x50] sm:$0xff] (!%p978_p4) }
 0x341   : > { %682 = vmax.xlane.f32.xlu0 (!%p978_p4), %v1487_v44  ;;  %1219 = vmatpush3.bf16.msra.mxu0 (!%p978_p4), %v1216_v57  ;;  %v744_v8 = vld [vmem:[%s1459_s17 + $0x48] sm:$0xff] (!%p978_p4)  ;;  %v746_v14 = vld [vmem:[%s1459_s17 + $0x58] sm:$0xff] (!%p978_p4)  ;;  %v747_v16 = vld [vmem:[%s1459_s17 + $0x60] sm:$0xff] (!%p978_p4) }
 0x342   : > { %1221 = vmatprep.subr.bf16.mxu0 (!%p978_p4), %v1220_v59  ;;  %v1232_v10 = vpack.c.bf16 (!%p978_p4), %v744_v8, %v743_v7  ;;  %v1236_v15 = vpack.c.bf16 (!%p978_p4), %v746_v14, %v745_v13  ;;  %v748_v17 = vld [vmem:[%s1459_s17 + $0x68] sm:$0xff] (!%p978_p4)  ;;  %v749_v18 = vld [vmem:[%s1459_s17 + $0x70] sm:$0xff] (!%p978_p4)  ;;  %v750_v20 = vld [vmem:[%s1459_s17 + $0x78] sm:$0xff] (!%p978_p4) }
 0x343   : > { %v1240_v19 = vpack.c.bf16 (!%p978_p4), %v748_v17, %v747_v16  ;;  %v1244_v21 = vpack.c.bf16 (!%p978_p4), %v750_v20, %v749_v18  ;;  %v722_v40 = vld [vmem:[#allocation4 + $0x8] sm:$0xff] (!%p978_p4)  ;;  %v721_v42 = vld [vmem:[#allocation4] sm:$0xff] (!%p978_p4) }
 0x345   : > { %1223 = vmatpush3.bf16.msra.mxu0 %v1220_v59 }
 0x346   : > { %1225 = vmatprep.subr.bf16.mxu0 %v1224_v62 }
 0x349   : > { %1227 = vmatpush3.bf16.msra.mxu0 %v1224_v62 }
 0x34a   : > { %1229 = vmatprep.subr.bf16.mxu0 %v1228_v1 }
 0x34d   : > { %1231 = vmatpush3.bf16.msra.mxu0 %v1228_v1 }
 0x34e   : > { %1233 = vmatprep.subr.bf16.mxu0 %v1232_v10 }
 0x351   : > { %1235 = vmatpush3.bf16.msra.mxu0 %v1232_v10 }
 0x352   : > { %1237 = vmatprep.subr.bf16.mxu0 %v1236_v15 }
 0x355   : > { %1239 = vmatpush3.bf16.msra.mxu0 %v1236_v15 }
 0x356   : > { %1241 = vmatprep.subr.bf16.mxu0 %v1240_v19 }
 0x359   : > { %1243 = vmatpush3.bf16.msra.mxu0 %v1240_v19 }
 0x35a   : > { %1245 = vmatprep.subr.bf16.mxu0 %v1244_v21 }
 0x35d   : > { %1247 = vmatpush3.bf16.msra.mxu0 %v1244_v21 }
 0x3ca   : > { %v681_v3 = vpop.xlane.xlu0 %680 }
 0x3cb   : > { %v684_v4 = vmax.f32 %v678_v2, %v681_v3 }
 0x3cd   : > { %v686_v6 = vsub.f32 %v678_v2, %v684_v4  ;;  %830 = vst.msk [vmem:[#allocation2] sm:$0xff] %vm718_vm3, %v684_v4  ;;  %694 = vperm.xlu1 %1303, %v684_v4  }
 0x3ce   : > { %v683_v9 = vpop.xlane.xlu0 %682 }
 0x3cf   : > { %v685_v11 = vmax.f32 %v679_v5, %v683_v9  ;;  %v688_v31 = vmul.f32 1.442695, %v686_v6 }
 0x3d1   : > { %v687_v12 = vsub.f32 %v679_v5, %v685_v11  ;;  %831 = vst.msk [vmem:[#allocation2 + $0x8] sm:$0xff] %vm718_vm3, %v685_v11  ;;  %699 = vperm.xlu1 %1303, %v685_v11  }
 0x3d3   : > { %v690_v30 = vmul.f32 1.442695, %v687_v12 }
 0x44c   : > { %v695_v22 = vpop.permute.xlu1 %694 }
 0x44d   : > { %v702_v23 = vsub.f32 %v1489_v45, %v695_v22  ;;  %v708_v45 = vld [vmem:[#allocation3] sm:$0xff] }
 0x44f   : > { %v704_v24 = vmul.f32 1.442695, %v702_v23 }
 0x450   : > { %v700_v25 = vpop.permute.xlu1 %699 }
 0x451   : > { %1305 = vpow2.f32 %v704_v24  ;;  %v703_v26 = vsub.f32 %v1487_v44, %v700_v25  ;;  %v709_v44 = vld [vmem:[#allocation3 + $0x8] sm:$0xff] }
 0x453   : > { %v706_v27 = vmul.f32 1.442695, %v703_v26 }
 0x455   : > { %1307 = vpow2.f32 %v706_v27 }
 0x456   : > { %1309 = vpow2.f32 %v690_v30 }
 0x457   : > { %1311 = vpow2.f32 %v688_v31 }
 0x45b   : > { %v1306_v28 = vpop.eup %1305 }
 0x45c   : > { %712 = vadd.xlane.f32.xlu0 %v1306_v28  ;;  %1149 = vmatprep.mubr.f32.mxu0 %v1306_v28 }
 0x45f   : > { %v1308_v29 = vpop.eup %1307 }
 0x460   : > { %714 = vadd.xlane.f32.xlu1 %v1308_v29  ;;  %1150 = vmatmul.mubr.f32.vlgmr.msra.gmra.mrb[0].mxu0 %v1308_v29  ;;  %v1310_v32 = vpop.eup %1309 }
 0x461   : > { %v1312_v33 = vpop.eup %1311  ;;  %v711_v37 = vmul.f32 %v1310_v32, %v709_v44 }
 0x462   : > { %v710_v34 = vmul.f32 %v1312_v33, %v708_v45 }
 0x471   : > { %730 = vperm.xlu1 %1303, %v1310_v32  }
 0x472   : > { %725 = vperm.xlu0 %1304, %v1312_v33  }
 0x4e9   : > { %v713_v35 = vpop.xlane.xlu0 %712 }
 0x4ea   : > { %v716_v36 = vadd.f32 %v713_v35, %v710_v34 }
 0x4ec   : > { %719 = vst.msk [vmem:[#allocation3] sm:$0xff] %vm718_vm3, %v716_v36 }
 0x4ed   : > { %v715_v38 = vpop.xlane.xlu1 %714 }
 0x4ee   : > { %v717_v39 = vadd.f32 %v715_v38, %v711_v37 }
 0x4f0   : > { %720 = vst.msk [vmem:[#allocation3 + $0x8] sm:$0xff] %vm718_vm3, %v717_v39 }
 0x4f1   : > { %v731_v41 = vpop.permute.xlu1 %730  ;;  %v726_v43 = vpop.permute.xlu0 %725 }
 0x4f2   : > { %v734_v46 = vmul.f32 %v731_v41, %v722_v40  ;;  %v733_v47 = vmul.f32 %v726_v43, %v721_v42 }
 0x533   : > { %v1151_v48 = vpop.f32.mrb[0].mxu0 }
 0x534   : > { %v827_v49 = vadd.f32 %v1151_v48, %v734_v46  ;;  %v817_v50 = vpop.f32.mrb[1].mxu0 }
 0x535   : > { %v826_v51 = vadd.f32 %v817_v50, %v733_v47 }
 0x536   : > { %829 = vst [vmem:[#allocation4 + $0x8] sm:$0xff] %v827_v49 }
 0x537   : > { %828 = vst [vmem:[#allocation4] sm:$0xff] %v826_v51 }
 0x538 PF: > { %834 = sbr.rel (%p976_p3) target bundleno = 1484 (0x5cc), region = 90  ;;  %v837_v52 = vld [vmem:[#allocation3] sm:$0xff] (!%p976_p3)  ;;  %v1362_v53 = vmov (!%p976_p3), 0   ;;  %v838_v54 = vld [vmem:[#allocation3 + $0x8] sm:$0xff] (!%p976_p3) }
 0x539   : > { %1313 = vset.pattern.permute.xlu0 (!%p976_p3), %v1362_v53 }
 0x53a   : > { %841 = vperm.xlu0 (!%p976_p3), %1313, %v837_v52  }
 0x53d   : > { %v836_v60 = vld [vmem:[#allocation4 + $0x8] sm:$0xff] (!%p976_p3) }
 0x53e   : > { %846 = vperm.xlu0 (!%p976_p3), %1313, %v838_v54   ;;  %v835_v57 = vld [vmem:[#allocation4] sm:$0xff] (!%p976_p3) }
 0x5b9   : > { %v842_v55 = vpop.permute.xlu0 %841 }
 0x5ba   : > { %1314 = vrcp.f32 %v842_v55 }
 0x5bd   : > { %v847_v56 = vpop.permute.xlu0 %846 }
 0x5be   : > { %1316 = vrcp.f32 %v847_v56 }
 0x5c4   : > { %v1315_v58 = vpop.eup %1314 }
 0x5c5   : > { %v850_v59 = vmul.f32 %v1315_v58, %v835_v57 }
 0x5c7   : > { %853 = vst [vmem:[%s1573_s4] sm:$0xff] %v850_v59 }
 0x5c8   : > { %v1317_v61 = vpop.eup %1316 }
 0x5c9   : > { %v852_v62 = vmul.f32 %v1317_v61, %v836_v60 }
 0x5cb   : > { %854 = vst [vmem:[%s1573_s4 + $0x8] sm:$0xff] %v852_v62 }
 0x5cc PF: > { %s15_s21 = sadd.s32 1, %s1356_s21   ;;  %s1574_s17 = smov %s1344_s18 }
 0x5cd   : > { %p12_p5 = scmp.ge.s32.totalorder %s15_s21, 5   ;;  %s1575_s18 = smov %s1426_s27 }
 0x5ce   : > { %s1576_s19 = smov %s1352_s20  ;;  %s1577_s20 = smov %s1579_s0 }
 0x5cf   :  { %14 = sbr.rel (!%p12_p5) target bundleno = 5 (0x5), region = 131 }

// kernel: word2vec_forward.4
= control target key start
LH: loop header
LB: loop body
LE: loop exit
PB: predicated region body
PF: predicated region fallthrough
CT: control target
= control target key end

     0   :  { %s1983_s0 = inlined_call_operand.<no memory space> [shape: s32[1], index: 0, kind: input, shape index: {}]   ;;  %s1984_s1 = inlined_call_operand.vmem [shape: f32[64,128], index: 1, kind: input, shape index: {}]   ;;  %s1985_s2 = inlined_call_operand.vmem [shape: f32[128,384], index: 2, kind: input, shape index: {}]   ;;  %s1986_s3 = inlined_call_operand.vmem [shape: f32[384,128], index: 3, kind: input, shape index: {}]   ;;  %s1987_s4 = inlined_call_operand.vmem [shape: f32[64,128], index: 4, kind: output, shape index: {}]  }
   0x1   :  { %9 = sst [smem:[#allocation6]] %s1983_s0 }
   0x2   :  { %s1676_s17 = smov 0   ;;  %s1678_s18 = smov 0  }
   0x3   :  { %s1680_s19 = smov 0   ;;  %s1682_s20 = smov 0  }
   0x4   :  { %s1684_s21 = smov 0   ;;  %s1686_s22 = smov 0  }
   0x5   :  { %s1688_s23 = smov 0  }
   0x6 LB: > { %s24_s0 = sadd.s32 1, %s1633_s21  ;;  %s27_s24 = sadd.s32 1, %s1637_s22  ;;  %s1641_s23 = sphi %s1688_s23, %s15_s23   ;;  %s1637_s22 = sphi %s1686_s22, %s1993_s22   ;;  %s1633_s21 = sphi %s1684_s21, %s1992_s21   ;;  %s1629_s20 = sphi %s1682_s20, %s1991_s20   ;;  %s1625_s19 = sphi %s1680_s19, %s1990_s19   ;;  %s1621_s18 = sphi %s1678_s18, %s1989_s18   ;;  %s1617_s17 = sphi %s1676_s17, %s1988_s17  }
   0x7   : > { %p25_p0 = scmp.ge.s32.totalorder %s24_s0, 3  ;;  %s69_s25 = sld [smem:[#allocation6]] }
   0x8   : > { %p85_p1 = scmp.ne.s32.totalorder %s1621_s18, %s1617_s17  ;;  %p86_p2 = scmp.eq.s32.totalorder %s1641_s23, 0 }
   0x9   : > { %s1995_s0 = smov (%p25_p0, %s24_s0), 0  ;;  %s1997_s24 = smov (!%p25_p0, %s27_s24), %s1637_s22 }
   0xa   : > { %p29_p3 = scmp.ge.s32.totalorder %s1997_s24, 2  ;;  %p87_p5 = por %p86_p2, %p85_p1 }
   0xb   : > { %s78_s29 = sadd.s32 1, %s1621_s18  ;;  %p1142_p8 = scmp.ge.s32.totalorder %s1641_s23, 6 }
   0xc   : > { %s1999_s24 = smov (%p29_p3, %s1997_s24), 0 }
   0xd   : > { %p70_p4 = scmp.lt.s32.totalorder %s1637_s22, %s69_s25  ;;  %p73_p6 = scmp.lt.s32.totalorder %s1999_s24, %s69_s25 }
   0xf   : > { %s71_s26 = scalar_select %p70_p4, %s1633_s21, 2 }
  0x10   : > { %s74_s27 = scalar_select %p73_p6, %s1995_s0, 2 }
  0x11   : > { %169 = sbr.rel (%p1142_p8) target bundleno = 45 (0x2d), region = 16 }
  0x12   : > { %s75_s28 = ssub.s32 %s71_s26, %s74_s27 }
  0x13   : > { %p76_p7 = scmp.eq.s32.totalorder %s75_s28, 0 }
  0x15   : > { %s1727_s30 = scalar_select %p76_p7, %s1621_s18, %s78_s29  }
  0x18   : > { %193 = sbr.rel (!%p87_p5) target bundleno = 45 (0x2d), region = 24  ;;  %s198_s5 = sld [smem:[#allocation6]] (%p87_p5) }
  0x19   : > { %s195_s6 = sand.u32 (%p87_p5), 1, %s1621_s18  }
  0x1a   : > { %s1143_s7 = sshll.u32 (%p87_p5), %s195_s6, 7 }
  0x1b   : > { %s197_s13 = scalar_lea.vmem (%p87_p5), [#allocation7], %s1143_s7 }
  0x1e   : > { %p199_p9 = scmp.lt.s32.totalorder (%p87_p5), %s1637_s22, %s198_s5 }
  0x20   : > { %s200_s8 = scalar_select %p199_p9, %s1633_s21, 2 }
  0x22   : > { %s1144_s9 = sshll.u32 %s200_s8, 3 }
  0x23   : > { %s1736_s12 = scalar_lea.vmem %s1985_s2, %s1144_s9 }
  0x24   : > { %v260_v0 = vld [vmem:[%s1736_s12] sm:$0xff]  ;;  %v262_v1 = vld [vmem:[%s1736_s12 + $0x18] sm:$0xff]  ;;  %v264_v2 = vld [vmem:[%s1736_s12 + $0x30] sm:$0xff] }
  0x25   : > { %261 = vst [vmem:[%s197_s13] sm:$0xff] %v260_v0  ;;  %263 = vst [vmem:[%s197_s13 + $0x8] sm:$0xff] %v262_v1  ;;  %v266_v3 = vld [vmem:[%s1736_s12 + $0x48] sm:$0xff]  ;;  %v268_v4 = vld [vmem:[%s1736_s12 + $0x60] sm:$0xff] }
  0x26   : > { %265 = vst [vmem:[%s197_s13 + $0x10] sm:$0xff] %v264_v2  ;;  %v270_v5 = vld [vmem:[%s1736_s12 + $0x78] sm:$0xff]  ;;  %267 = vst [vmem:[%s197_s13 + $0x18] sm:$0xff] %v266_v3  ;;  %v272_v6 = vld [vmem:[%s1736_s12 + $0x90] sm:$0xff] }
  0x27   : > { %269 = vst [vmem:[%s197_s13 + $0x20] sm:$0xff] %v268_v4  ;;  %271 = vst [vmem:[%s197_s13 + $0x28] sm:$0xff] %v270_v5  ;;  %v274_v7 = vld [vmem:[%s1736_s12 + $0xa8] sm:$0xff]  ;;  %v276_v8 = vld [vmem:[%s1736_s12 + $0xc0] sm:$0xff] }
  0x28   : > { %273 = vst [vmem:[%s197_s13 + $0x30] sm:$0xff] %v272_v6  ;;  %275 = vst [vmem:[%s197_s13 + $0x38] sm:$0xff] %v274_v7  ;;  %v278_v9 = vld [vmem:[%s1736_s12 + $0xd8] sm:$0xff]  ;;  %v280_v10 = vld [vmem:[%s1736_s12 + $0xf0] sm:$0xff] }
  0x29   : > { %277 = vst [vmem:[%s197_s13 + $0x40] sm:$0xff] %v276_v8  ;;  %v282_v11 = vld [vmem:[%s1736_s12 + $0x108] sm:$0xff]  ;;  %279 = vst [vmem:[%s197_s13 + $0x48] sm:$0xff] %v278_v9  ;;  %v284_v12 = vld [vmem:[%s1736_s12 + $0x120] sm:$0xff] }
  0x2a   : > { %281 = vst [vmem:[%s197_s13 + $0x50] sm:$0xff] %v280_v10  ;;  %283 = vst [vmem:[%s197_s13 + $0x58] sm:$0xff] %v282_v11  ;;  %v286_v13 = vld [vmem:[%s1736_s12 + $0x138] sm:$0xff]  ;;  %v288_v14 = vld [vmem:[%s1736_s12 + $0x150] sm:$0xff] }
  0x2b   : > { %285 = vst [vmem:[%s197_s13 + $0x60] sm:$0xff] %v284_v12  ;;  %287 = vst [vmem:[%s197_s13 + $0x68] sm:$0xff] %v286_v13  ;;  %v290_v15 = vld [vmem:[%s1736_s12 + $0x168] sm:$0xff] }
  0x2c   : > { %289 = vst [vmem:[%s197_s13 + $0x70] sm:$0xff] %v288_v14  ;;  %291 = vst [vmem:[%s197_s13 + $0x78] sm:$0xff] %v290_v15 }
  0x2d PF: > { %p1145_p10 = scmp.ge.s32.totalorder %s1641_s23, 1  ;;  %p311_p11 = scmp.lt.s32.totalorder %s1641_s23, 7 }
  0x2f   : > { %p312_p12 = pnand %p1145_p10, %p311_p11 }
  0x30   : > { %s318_s14 = sand.u32 (!%p312_p12), 1, %s1617_s17   ;;  %s360_s15 = sld [smem:[#allocation6]] (!%p312_p12) }
  0x31   : > { %315 = sbr.rel (%p312_p12) target bundleno = 1506 (0x5e2), region = 66  ;;  %s1146_s16 = sshll.u32 (!%p312_p12), %s318_s14, 7 }
  0x32   : > { %s1152_s25 = sshll.u32 (!%p312_p12), %s1629_s20, 2 }
  0x33   : > { %p394_p13 = scmp.lt.s32.totalorder (!%p312_p12), %s1152_s25, 7 }
  0x36   : > { %s1147_s26 = sadd.s32 (!%p312_p12), 4294967295, %s360_s15  ;;  %p382_p0 = scmp.lt.s32.totalorder (!%p312_p12), %s1629_s20, %s360_s15 }
  0x37   : > { %p362_p1 = scmp.gt.s32.totalorder (!%p312_p12), %s1147_s26, 0  ;;  %p1154_p5 = scmp.ge.s32.totalorder (!%p312_p12), %s1629_s20, %s360_s15 }
  0x38   : > { %s2001_s25 = smov (!%p394_p13, %s1152_s25), 7  ;;  %p1155_p6 = scmp.ne.s32.totalorder (!%p1154_p5), %s1625_s19, 0 }
  0x39   : > { %s1153_s27 = sshll.u32 %s2001_s25, 3  ;;  %s2003_s26 = smov (!%p362_p1, %s1147_s26), 0 }
  0x3a   : > { %s383_s28 = scalar_select %p382_p0, %s1625_s19, 2 }
  0x3b   : > { %s1763_s7 = scalar_lea.vmem %s1987_s4, %s1153_s27  ;;  %p364_p2 = scmp.lt.s32.totalorder %s1629_s20, %s2003_s26 }
  0x3c   : > { %s1150_s29 = sshll.u32 %s383_s28, 4  ;;  %s1777_s27 = scalar_lea.vmem [#allocation7], %s1146_s16 }
  0x3d   : > { %p385_p3 = scmp.lt.s32.totalorder %s1150_s29, 47 }
  0x3e   : > { %s365_s17 = scalar_select %p364_p2, %s1629_s20, %s2003_s26 }
  0x3f   : > { %s2005_s29 = smov (!%p385_p3, %s1150_s29), 47  ;;  %403 = sbr.rel (%p1154_p5) target bundleno = 1506 (0x5e2), region = 74 }
  0x40   : > { %s1148_s8 = sshll.u32 %s365_s17, 2  ;;  %s1151_s9 = sshll.u32 %s2005_s29, 3 }
  0x41   : > { %p367_p4 = scmp.lt.s32.totalorder %s1148_s8, 7  ;;  %s1770_s12 = scalar_lea.vmem %s1986_s3, %s1151_s9 }
  0x43   : > { %s2007_s8 = smov (!%p367_p4, %s1148_s8), 7 }
  0x44   : > { %s1149_s13 = sshll.u32 %s2007_s8, 3 }
  0x45   : > { %s1775_s28 = scalar_lea.vmem %s1984_s1, %s1149_s13 }
  0x46   : > { %407 = sbr.rel (%p1155_p6) target bundleno = 77 (0x4d), region = 78  ;;  %vm408_vm0 = vcmask (!%p1155_p6), 7168   ;;  %v1643_v16 = vmov (!%p1155_p6), -inf   ;;  %v1644_v17 = vmov (!%p1155_p6), 0.0  }
  0x47   : > { %409 = vst.msk [vmem:[#allocation2] sm:$0xff] (!%p1155_p6), %vm408_vm0, %v1643_v16  ;;  %410 = vst.msk [vmem:[#allocation2 + $0x8] sm:$0xff] (!%p1155_p6), %vm408_vm0, %v1643_v16 }
  0x48   : > { %411 = vst.msk [vmem:[#allocation2 + $0x10] sm:$0xff] (!%p1155_p6), %vm408_vm0, %v1643_v16  ;;  %412 = vst.msk [vmem:[#allocation2 + $0x18] sm:$0xff] (!%p1155_p6), %vm408_vm0, %v1643_v16 }
  0x49   : > { %413 = vst.msk [vmem:[#allocation3] sm:$0xff] (!%p1155_p6), %vm408_vm0, %v1644_v17  ;;  %414 = vst.msk [vmem:[#allocation3 + $0x8] sm:$0xff] (!%p1155_p6), %vm408_vm0, %v1644_v17 }
  0x4a   : > { %415 = vst.msk [vmem:[#allocation3 + $0x10] sm:$0xff] (!%p1155_p6), %vm408_vm0, %v1644_v17  ;;  %416 = vst.msk [vmem:[#allocation3 + $0x18] sm:$0xff] (!%p1155_p6), %vm408_vm0, %v1644_v17 }
  0x4b   : > { %417 = vst [vmem:[#allocation4] sm:$0xff] (!%p1155_p6), %v1644_v17  ;;  %418 = vst [vmem:[#allocation4 + $0x8] sm:$0xff] (!%p1155_p6), %v1644_v17 }
  0x4c   : > { %419 = vst [vmem:[#allocation4 + $0x10] sm:$0xff] (!%p1155_p6), %v1644_v17  ;;  %420 = vst [vmem:[#allocation4 + $0x18] sm:$0xff] (!%p1155_p6), %v1644_v17 }
  0x4d PF: > { %v425_v18 = vld [vmem:[%s1777_s27] sm:$0xff]  ;;  %v426_v19 = vld [vmem:[%s1777_s27 + $0x8] sm:$0xff]  ;;  %v427_v20 = vld [vmem:[%s1777_s27 + $0x10] sm:$0xff]  ;;  %p1156_p7 = scmp.ne.s32.totalorder %s1625_s19, 2 }
  0x4e   : > { %v1336_v21 = vpack.c.bf16 %v426_v19, %v425_v18  ;;  %v428_v22 = vld [vmem:[%s1777_s27 + $0x18] sm:$0xff]  ;;  %v429_v24 = vld [vmem:[%s1777_s27 + $0x20] sm:$0xff]  ;;  %v430_v25 = vld [vmem:[%s1777_s27 + $0x28] sm:$0xff]  ;;  %s1157_s20 = sshll.u32 (!%p1156_p7), %s1625_s19, 7  ;;  %v531_v50 = vlaneseq (!%p1156_p7)  ;;  %v1645_v58 = vmov (!%p1156_p7), 0   ;;  %vm620_vm2 = vcmask (!%p1156_p7), 7168  }
  0x4f   : > { %v1340_v23 = vpack.c.bf16 %v428_v22, %v427_v20  ;;  %v1344_v26 = vpack.c.bf16 %v430_v25, %v429_v24  ;;  %v421_v27 = vld [vmem:[%s1775_s28] sm:$0xff]  ;;  %v423_v28 = vld [vmem:[%s1775_s28 + $0x10] sm:$0xff]  ;;  %v432_v30 = vld [vmem:[%s1777_s27 + $0x38] sm:$0xff]  ;;  %v533_v51 = vstv (!%p1156_p7), %s1157_s20  ;;  %1541 = vset.pattern.permute.xlu0 (!%p1156_p7), %v1645_v58  ;;  %1542 = vset.pattern.permute.xlu1 (!%p1156_p7), %v1645_v58 }
  0x50   : > { %1337 = vmatprep.subr.bf16.mxu0 %v1336_v21  ;;  %1432 = vmatprep.subr.bf16.mxu1 %v1336_v21  ;;  %v431_v29 = vld [vmem:[%s1777_s27 + $0x30] sm:$0xff]  ;;  %v433_v32 = vld [vmem:[%s1777_s27 + $0x40] sm:$0xff]  ;;  %v434_v33 = vld [vmem:[%s1777_s27 + $0x48] sm:$0xff]  ;;  %v532_v52 = vand.u32 (!%p1156_p7), 127, %v531_v50 }
  0x51   : > { %1339 = vmatpush3.bf16.msra.mxu0 %v1336_v21  ;;  %1440 = vmatpush3.bf16.msra.mxu1 %v1336_v21  ;;  %v1348_v31 = vpack.c.bf16 %v432_v30, %v431_v29  ;;  %v1352_v34 = vpack.c.bf16 %v434_v33, %v433_v32  ;;  %v435_v35 = vld [vmem:[%s1777_s27 + $0x50] sm:$0xff]  ;;  %v436_v36 = vld [vmem:[%s1777_s27 + $0x58] sm:$0xff]  ;;  %v437_v38 = vld [vmem:[%s1777_s27 + $0x60] sm:$0xff] }
  0x52   : > { %1341 = vmatprep.subr.bf16.mxu0 %v1340_v23  ;;  %1433 = vmatprep.subr.bf16.mxu1 %v1340_v23  ;;  %v1356_v37 = vpack.c.bf16 %v436_v36, %v435_v35  ;;  %v438_v39 = vld [vmem:[%s1777_s27 + $0x68] sm:$0xff]  ;;  %v439_v41 = vld [vmem:[%s1777_s27 + $0x70] sm:$0xff]  ;;  %v440_v42 = vld [vmem:[%s1777_s27 + $0x78] sm:$0xff]  ;;  %v534_v53 = vadd.s32 (!%p1156_p7), %v533_v51, %v532_v52 }
  0x53   : > { %1254 = vmatprep.mubr.f32.mxu0 %v421_v27  ;;  %1257 = vmatprep.mubr.f32.mxu1 %v423_v28  ;;  %v1360_v40 = vpack.c.bf16 %v438_v39, %v437_v38  ;;  %v1364_v43 = vpack.c.bf16 %v440_v42, %v439_v41  ;;  %v422_v44 = vld [vmem:[%s1775_s28 + $0x8] sm:$0xff]  ;;  %v424_v45 = vld [vmem:[%s1775_s28 + $0x18] sm:$0xff]  ;;  %v653_v59 = vld [vmem:[%s1770_s12] sm:$0xff] (!%p1156_p7) }
  0x54   : > { %vm535_vm1 = vcmp.lt.s32.totalorder (!%p1156_p7), %v534_v53, 320  ;;  %v654_v60 = vld [vmem:[%s1770_s12 + $0x8] sm:$0xff] (!%p1156_p7)  ;;  %v655_v61 = vld [vmem:[%s1770_s12 + $0x10] sm:$0xff] (!%p1156_p7)  ;;  %v656_v63 = vld [vmem:[%s1770_s12 + $0x18] sm:$0xff] (!%p1156_p7) }
  0x55   : > { %1343 = vmatpush3.bf16.msra.mxu0 %v1340_v23  ;;  %1441 = vmatpush3.bf16.msra.mxu1 %v1340_v23  ;;  %v1368_v62 = vpack.c.bf16 (!%p1156_p7), %v654_v60, %v653_v59  ;;  %v1372_v0 = vpack.c.bf16 (!%p1156_p7), %v656_v63, %v655_v61  ;;  %v657_v1 = vld [vmem:[%s1770_s12 + $0x20] sm:$0xff] (!%p1156_p7)  ;;  %v658_v2 = vld [vmem:[%s1770_s12 + $0x28] sm:$0xff] (!%p1156_p7)  ;;  %v1840_v10 = vld [vmem:[#allocation2 + $0x10] sm:$0xff] (!%p1156_p7) }
  0x56   : > { %1345 = vmatprep.subr.bf16.mxu0 %v1344_v26  ;;  %1434 = vmatprep.subr.bf16.mxu1 %v1344_v26  ;;  %v1376_v3 = vpack.c.bf16 (!%p1156_p7), %v658_v2, %v657_v1  ;;  %v540_v4 = vld [vmem:[#allocation2] sm:$0xff] (!%p1156_p7)  ;;  %v1835_v5 = vld [vmem:[#allocation2 + $0x8] sm:$0xff] (!%p1156_p7)  ;;  %v1842_v11 = vld [vmem:[#allocation2 + $0x18] sm:$0xff] (!%p1156_p7) }
  0x57   : > { %v659_v14 = vld [vmem:[%s1770_s12 + $0x30] sm:$0xff] (!%p1156_p7)  ;;  %v660_v15 = vld [vmem:[%s1770_s12 + $0x38] sm:$0xff] (!%p1156_p7)  ;;  %v661_v24 = vld [vmem:[%s1770_s12 + $0x40] sm:$0xff] (!%p1156_p7) }
  0x58   : > { %v1380_v18 = vpack.c.bf16 (!%p1156_p7), %v660_v15, %v659_v14  ;;  %v662_v25 = vld [vmem:[%s1770_s12 + $0x48] sm:$0xff] (!%p1156_p7)  ;;  %v663_v27 = vld [vmem:[%s1770_s12 + $0x50] sm:$0xff] (!%p1156_p7)  ;;  %v664_v28 = vld [vmem:[%s1770_s12 + $0x58] sm:$0xff] (!%p1156_p7) }
  0x59   : > { %1347 = vmatpush3.bf16.msra.mxu0 %v1344_v26  ;;  %1442 = vmatpush3.bf16.msra.mxu1 %v1344_v26  ;;  %v1384_v26 = vpack.c.bf16 (!%p1156_p7), %v662_v25, %v661_v24  ;;  %v1388_v29 = vpack.c.bf16 (!%p1156_p7), %v664_v28, %v663_v27  ;;  %v665_v30 = vld [vmem:[%s1770_s12 + $0x60] sm:$0xff] (!%p1156_p7)  ;;  %v668_v35 = vld [vmem:[%s1770_s12 + $0x78] sm:$0xff] (!%p1156_p7)  ;;  %v627_v25 = vld [vmem:[#allocation4 + $0x10] sm:$0xff] (!%p1156_p7) }
  0x5a   : > { %1349 = vmatprep.subr.bf16.mxu0 %v1348_v31  ;;  %1435 = vmatprep.subr.bf16.mxu1 %v1348_v31 }
  0x5d   : > { %1351 = vmatpush3.bf16.msra.mxu0 %v1348_v31  ;;  %1443 = vmatpush3.bf16.msra.mxu1 %v1348_v31  ;;  %v666_v31 = vld [vmem:[%s1770_s12 + $0x68] sm:$0xff] (!%p1156_p7) }
  0x5e   : > { %1353 = vmatprep.subr.bf16.mxu0 %v1352_v34  ;;  %1436 = vmatprep.subr.bf16.mxu1 %v1352_v34  ;;  %v1392_v32 = vpack.c.bf16 (!%p1156_p7), %v666_v31, %v665_v30 }
  0x61   : > { %1355 = vmatpush3.bf16.msra.mxu0 %v1352_v34  ;;  %1444 = vmatpush3.bf16.msra.mxu1 %v1352_v34  ;;  %v667_v34 = vld [vmem:[%s1770_s12 + $0x70] sm:$0xff] (!%p1156_p7) }
  0x62   : > { %1357 = vmatprep.subr.bf16.mxu0 %v1356_v37  ;;  %1437 = vmatprep.subr.bf16.mxu1 %v1356_v37  ;;  %v1396_v36 = vpack.c.bf16 (!%p1156_p7), %v668_v35, %v667_v34 }
  0x65   : > { %1359 = vmatpush3.bf16.msra.mxu0 %v1356_v37  ;;  %1445 = vmatpush3.bf16.msra.mxu1 %v1356_v37 }
  0x66   : > { %1361 = vmatprep.subr.bf16.mxu0 %v1360_v40  ;;  %1438 = vmatprep.subr.bf16.mxu1 %v1360_v40 }
  0x69   : > { %1363 = vmatpush3.bf16.msra.mxu0 %v1360_v40  ;;  %1446 = vmatpush3.bf16.msra.mxu1 %v1360_v40 }
  0x6a   : > { %1365 = vmatprep.subr.bf16.mxu0 %v1364_v43  ;;  %1439 = vmatprep.subr.bf16.mxu1 %v1364_v43 }
  0x6d   : > { %1367 = vmatpush3.bf16.msra.mxu0 %v1364_v43  ;;  %1447 = vmatpush3.bf16.msra.mxu1 %v1364_v43 }
  0x6e   : > { %1369 = vmatprep.subr.bf16.mxu0 (!%p1156_p7), %v1368_v62  ;;  %1448 = vmatprep.subr.bf16.mxu1 (!%p1156_p7), %v1368_v62 }
  0x70   : > { %1255 = vmatmul.mubr.f32.vlgmr.msra.gmra.mrb[0].mxu0 %v422_v44  ;;  %1258 = vmatmul.mubr.f32.vlgmr.msra.gmra.mrb[0].mxu1 %v424_v45 }
  0x71   : > { %1371 = vmatpush3.bf16.msra.mxu0 (!%p1156_p7), %v1368_v62  ;;  %1456 = vmatpush3.bf16.msra.mxu1 (!%p1156_p7), %v1368_v62 }
  0x72   : > { %1373 = vmatprep.subr.bf16.mxu0 (!%p1156_p7), %v1372_v0  ;;  %1449 = vmatprep.subr.bf16.mxu1 (!%p1156_p7), %v1372_v0 }
  0x75   : > { %1375 = vmatpush3.bf16.msra.mxu0 (!%p1156_p7), %v1372_v0  ;;  %1457 = vmatpush3.bf16.msra.mxu1 (!%p1156_p7), %v1372_v0  ;;  %v600_v0 = vld [vmem:[#allocation3] sm:$0xff] (!%p1156_p7) }
  0x76   : > { %1377 = vmatprep.subr.bf16.mxu0 (!%p1156_p7), %v1376_v3  ;;  %1450 = vmatprep.subr.bf16.mxu1 (!%p1156_p7), %v1376_v3 }
  0x79   : > { %1379 = vmatpush3.bf16.msra.mxu0 (!%p1156_p7), %v1376_v3  ;;  %1458 = vmatpush3.bf16.msra.mxu1 (!%p1156_p7), %v1376_v3 }
  0x7a   : > { %1381 = vmatprep.subr.bf16.mxu0 (!%p1156_p7), %v1380_v18  ;;  %1451 = vmatprep.subr.bf16.mxu1 (!%p1156_p7), %v1380_v18 }
  0x7d   : > { %1383 = vmatpush3.bf16.msra.mxu0 (!%p1156_p7), %v1380_v18  ;;  %1459 = vmatpush3.bf16.msra.mxu1 (!%p1156_p7), %v1380_v18 }
  0x7e   : > { %1385 = vmatprep.subr.bf16.mxu0 (!%p1156_p7), %v1384_v26  ;;  %1452 = vmatprep.subr.bf16.mxu1 (!%p1156_p7), %v1384_v26 }
  0x81   : > { %1387 = vmatpush3.bf16.msra.mxu0 (!%p1156_p7), %v1384_v26  ;;  %1460 = vmatpush3.bf16.msra.mxu1 (!%p1156_p7), %v1384_v26 }
  0x82   : > { %1389 = vmatprep.subr.bf16.mxu0 (!%p1156_p7), %v1388_v29  ;;  %1453 = vmatprep.subr.bf16.mxu1 (!%p1156_p7), %v1388_v29 }
  0x85   : > { %1391 = vmatpush3.bf16.msra.mxu0 (!%p1156_p7), %v1388_v29  ;;  %1461 = vmatpush3.bf16.msra.mxu1 (!%p1156_p7), %v1388_v29 }
  0x86   : > { %1393 = vmatprep.subr.bf16.mxu0 (!%p1156_p7), %v1392_v32  ;;  %1454 = vmatprep.subr.bf16.mxu1 (!%p1156_p7), %v1392_v32 }
  0x89   : > { %1395 = vmatpush3.bf16.msra.mxu0 (!%p1156_p7), %v1392_v32  ;;  %1462 = vmatpush3.bf16.msra.mxu1 (!%p1156_p7), %v1392_v32 }
  0x8a   : > { %1397 = vmatprep.subr.bf16.mxu0 (!%p1156_p7), %v1396_v36  ;;  %1455 = vmatprep.subr.bf16.mxu1 (!%p1156_p7), %v1396_v36 }
  0x8d   : > { %1399 = vmatpush3.bf16.msra.mxu0 (!%p1156_p7), %v1396_v36  ;;  %1463 = vmatpush3.bf16.msra.mxu1 (!%p1156_p7), %v1396_v36 }
 0x13e   : > { %529 = sbr.rel (%p1156_p7) target bundleno = 841 (0x349), region = 82 }
 0x143   : > { %v1801_v46 = vpop.f32.mrb[0].mxu0  ;;  %v1803_v47 = vpop.f32.mrb[0].mxu1 }
 0x144   : > { %v1805_v48 = vpop.f32.mrb[1].mxu0  ;;  %v1807_v49 = vpop.f32.mrb[1].mxu1  ;;  %v1817_v55 = vsel (!%p1156_p7), %vm535_vm1, %v1801_v46, -inf  ;;  %v1825_v57 = vsel (!%p1156_p7), %vm535_vm1, %v1803_v47, -inf }
 0x145   : > { %v1814_v54 = vsel %vm535_vm1, %v1805_v48, -inf  ;;  %546 = vmax.xlane.f32.xlu1 %v1817_v55  ;;  %v1822_v56 = vsel %vm535_vm1, %v1807_v49, -inf }
 0x146   : > { %544 = vmax.xlane.f32.xlu0 %v1814_v54 }
 0x149   : > { %550 = vmax.xlane.f32.xlu1 %v1825_v57 }
 0x14a   : > { %548 = vmax.xlane.f32.xlu0 %v1822_v56 }
 0x1d2   : > { %v547_v7 = vpop.xlane.xlu1 %546 }
 0x1d3   : > { %v545_v6 = vpop.xlane.xlu0 %544  ;;  %v1838_v9 = vmax.f32 %v1835_v5, %v547_v7 }
 0x1d4   : > { %v552_v8 = vmax.f32 %v540_v4, %v545_v6 }
 0x1d5   : > { %v557_v13 = vsub.f32 %v1835_v5, %v1838_v9  ;;  %763 = vst.msk [vmem:[#allocation2 + $0x8] sm:$0xff] %vm620_vm2, %v1838_v9 }
 0x1d6   : > { %v556_v12 = vsub.f32 %v540_v4, %v552_v8  ;;  %762 = vst.msk [vmem:[#allocation2] sm:$0xff] %vm620_vm2, %v552_v8  ;;  %570 = vperm.xlu0 %1541, %v552_v8   ;;  %v551_v17 = vpop.xlane.xlu1 %550  ;;  %v601_v4 = vld [vmem:[#allocation3 + $0x8] sm:$0xff] }
 0x1d7   : > { %v549_v16 = vpop.xlane.xlu0 %548  ;;  %v1855_v21 = vmax.f32 %v1842_v11, %v551_v17  ;;  %v626_v17 = vld [vmem:[#allocation4 + $0x8] sm:$0xff] }
 0x1d8   : > { %v560_v19 = vmul.f32 1.442695, %v556_v12  ;;  %v1852_v20 = vmax.f32 %v1840_v10, %v549_v16  ;;  %v603_v12 = vld [vmem:[#allocation3 + $0x18] sm:$0xff] }
 0x1d9   : > { %v559_v23 = vsub.f32 %v1842_v11, %v1855_v21  ;;  %765 = vst.msk [vmem:[#allocation2 + $0x18] sm:$0xff] %vm620_vm2, %v1855_v21 }
 0x1da   : > { %1543 = vpow2.f32 %v560_v19  ;;  %v558_v22 = vsub.f32 %v1840_v10, %v1852_v20  ;;  %764 = vst.msk [vmem:[#allocation2 + $0x10] sm:$0xff] %vm620_vm2, %v1852_v20  ;;  %580 = vperm.xlu1 %1542, %v1852_v20   ;;  %v625_v19 = vld [vmem:[#allocation4] sm:$0xff] }
 0x1db   : > { %v566_v61 = vmul.f32 1.442695, %v559_v23 }
 0x1de   : > { %575 = vperm.xlu1 %1542, %v1838_v9   ;;  %v602_v9 = vld [vmem:[#allocation3 + $0x10] sm:$0xff] }
 0x1e2   : > { %585 = vperm.xlu1 %1542, %v1855_v21  }
 0x1e4   : > { %v1544_v33 = vpop.eup %1543 }
 0x1e5   : > { %v604_v1 = vmul.f32 %v1544_v33, %v600_v0 }
 0x1e6   : > { %631 = vperm.xlu1 %1542, %v1544_v33  }
 0x255   : > { %v571_v37 = vpop.permute.xlu0 %570 }
 0x256   : > { %v588_v38 = vsub.f32 %v1814_v54, %v571_v37  ;;  %v564_v54 = vmul.f32 1.442695, %v558_v22  ;;  %v628_v22 = vld [vmem:[#allocation4 + $0x18] sm:$0xff] }
 0x258   : > { %v592_v39 = vmul.f32 1.442695, %v588_v38 }
 0x259   : > { %v581_v40 = vpop.permute.xlu1 %580 }
 0x25a   : > { %1545 = vpow2.f32 %v592_v39  ;;  %v590_v41 = vsub.f32 %v1822_v56, %v581_v40 }
 0x25c   : > { %v596_v42 = vmul.f32 1.442695, %v590_v41 }
 0x25d   : > { %v576_v43 = vpop.permute.xlu1 %575 }
 0x25e   : > { %1547 = vpow2.f32 %v596_v42  ;;  %v589_v44 = vsub.f32 %v1817_v55, %v576_v43  ;;  %v562_v55 = vmul.f32 1.442695, %v557_v13 }
 0x260   : > { %v594_v45 = vmul.f32 1.442695, %v589_v44 }
 0x261   : > { %v586_v50 = vpop.permute.xlu1 %585 }
 0x262   : > { %1549 = vpow2.f32 %v594_v45  ;;  %v591_v51 = vsub.f32 %v1825_v57, %v586_v50 }
 0x264   : > { %v1546_v52 = vpop.eup %1545  ;;  %v598_v53 = vmul.f32 1.442695, %v591_v51 }
 0x265   : > { %608 = vadd.xlane.f32.xlu1 %v1546_v52  ;;  %1292 = vmatprep.mubr.f32.mxu0 %v1546_v52  ;;  %v632_v63 = vpop.permute.xlu1 %631 }
 0x266   : > { %1551 = vpow2.f32 %v598_v53  ;;  %v649_v21 = vmul.f32 %v632_v63, %v625_v19 }
 0x267   : > { %1553 = vpow2.f32 %v564_v54 }
 0x268   : > { %v1548_v58 = vpop.eup %1547  ;;  %1555 = vpow2.f32 %v562_v55 }
 0x269   : > { %1295 = vmatprep.mubr.f32.mxu1 %v1548_v58  ;;  %1557 = vpow2.f32 %v566_v61 }
 0x26c   : > { %v1550_v56 = vpop.eup %1549 }
 0x26d   : > { %610 = vadd.xlane.f32.xlu0 %v1550_v56  ;;  %1293 = vmatmul.mubr.f32.vlgmr.msra.gmra.mrb[0].mxu0 %v1550_v56 }
 0x270   : > { %v1552_v59 = vpop.eup %1551 }
 0x271   : > { %1296 = vmatmul.mubr.f32.vlgmr.msra.gmra.mrb[0].mxu1 %v1552_v59  ;;  %v1554_v60 = vpop.eup %1553 }
 0x272   : > { %v1556_v57 = vpop.eup %1555  ;;  %v606_v10 = vmul.f32 %v1554_v60, %v602_v9 }
 0x273   : > { %v1558_v62 = vpop.eup %1557  ;;  %v605_v5 = vmul.f32 %v1556_v57, %v601_v4 }
 0x274   : > { %v607_v14 = vmul.f32 %v1558_v62, %v603_v12 }
 0x276   : > { %641 = vperm.xlu1 %1542, %v1554_v60  }
 0x283   : > { %636 = vperm.xlu0 %1541, %v1556_v57  }
 0x29a   : > { %612 = vadd.xlane.f32.xlu1 %v1548_v58 }
 0x29e   : > { %614 = vadd.xlane.f32.xlu1 %v1552_v59 }
 0x2af   : > { %646 = vperm.xlu1 %1542, %v1558_v62  }
 0x2f2   : > { %v609_v2 = vpop.xlane.xlu1 %608 }
 0x2f3   : > { %v616_v3 = vadd.f32 %v609_v2, %v604_v1 }
 0x2f5   : > { %621 = vst.msk [vmem:[#allocation3] sm:$0xff] %vm620_vm2, %v616_v3 }
 0x2f6   : > { %v642_v8 = vpop.permute.xlu1 %641 }
 0x2f7   : > { %v651_v30 = vmul.f32 %v642_v8, %v627_v25 }
 0x2fa   : > { %v611_v6 = vpop.xlane.xlu0 %610 }
 0x2fb   : > { %v617_v7 = vadd.f32 %v611_v6, %v605_v5 }
 0x2fd   : > { %622 = vst.msk [vmem:[#allocation3 + $0x8] sm:$0xff] %vm620_vm2, %v617_v7 }
 0x302   : > { %v637_v18 = vpop.permute.xlu0 %636 }
 0x303   : > { %v650_v20 = vmul.f32 %v637_v18, %v626_v17 }
 0x327   : > { %v613_v11 = vpop.xlane.xlu1 %612 }
 0x328   : > { %v618_v13 = vadd.f32 %v613_v11, %v606_v10 }
 0x32a   : > { %623 = vst.msk [vmem:[#allocation3 + $0x10] sm:$0xff] %vm620_vm2, %v618_v13 }
 0x32b   : > { %v615_v15 = vpop.xlane.xlu1 %614 }
 0x32c   : > { %v619_v16 = vadd.f32 %v615_v15, %v607_v14 }
 0x32e   : > { %624 = vst.msk [vmem:[#allocation3 + $0x18] sm:$0xff] %vm620_vm2, %v619_v16 }
 0x32f   : > { %v647_v23 = vpop.permute.xlu1 %646 }
 0x330   : > { %v652_v29 = vmul.f32 %v647_v23, %v628_v22 }
 0x340   : > { %v1294_v24 = vpop.f32.mrb[0].mxu0 }
 0x341   : > { %v755_v26 = vadd.f32 %v1294_v24, %v650_v20  ;;  %v735_v27 = vpop.f32.mrb[1].mxu0 }
 0x342   : > { %v754_v28 = vadd.f32 %v735_v27, %v649_v21 }
 0x343   : > { %759 = vst [vmem:[#allocation4 + $0x8] sm:$0xff] %v755_v26 }
 0x344   : > { %758 = vst [vmem:[#allocation4] sm:$0xff] %v754_v28  ;;  %v1297_v31 = vpop.f32.mrb[0].mxu1 }
 0x345   : > { %v757_v32 = vadd.f32 %v1297_v31, %v652_v29  ;;  %v745_v33 = vpop.f32.mrb[1].mxu1 }
 0x346   : > { %v756_v34 = vadd.f32 %v745_v33, %v651_v30 }
 0x347   : > { %761 = vst [vmem:[#allocation4 + $0x18] sm:$0xff] %v757_v32 }
 0x348   : > { %760 = vst [vmem:[#allocation4 + $0x10] sm:$0xff] %v756_v34 }
 0x349 PF: > { %p1158_p8 = scmp.eq.s32.totalorder %s1625_s19, 2 }
 0x34a   : > { %774 = vmax.xlane.f32.xlu0 (!%p1158_p8), %v1805_v48  ;;  %776 = vmax.xlane.f32.xlu1 (!%p1158_p8), %v1801_v46  ;;  %v1646_v35 = vmov (!%p1158_p8), 0   ;;  %v883_v36 = vld [vmem:[%s1770_s12] sm:$0xff] (!%p1158_p8)  ;;  %v884_v37 = vld [vmem:[%s1770_s12 + $0x8] sm:$0xff] (!%p1158_p8)  ;;  %v885_v38 = vld [vmem:[%s1770_s12 + $0x10] sm:$0xff] (!%p1158_p8)  ;;  %vm850_vm3 = vcmask (!%p1158_p8), 7168  }
 0x34b   : > { %769 = sbr.rel (%p1158_p8) target bundleno = 1357 (0x54d), region = 86  ;;  %1559 = vset.pattern.permute.xlu0 (!%p1158_p8), %v1646_v35  ;;  %1560 = vset.pattern.permute.xlu1 (!%p1158_p8), %v1646_v35  ;;  %v1400_v39 = vpack.c.bf16 (!%p1158_p8), %v884_v37, %v883_v36  ;;  %v886_v40 = vld [vmem:[%s1770_s12 + $0x18] sm:$0xff] (!%p1158_p8)  ;;  %v887_v42 = vld [vmem:[%s1770_s12 + $0x20] sm:$0xff] (!%p1158_p8)  ;;  %v888_v43 = vld [vmem:[%s1770_s12 + $0x28] sm:$0xff] (!%p1158_p8) }
 0x34c   : > { %v1404_v41 = vpack.c.bf16 (!%p1158_p8), %v886_v40, %v885_v38  ;;  %v1408_v44 = vpack.c.bf16 (!%p1158_p8), %v888_v43, %v887_v42  ;;  %v770_v45 = vld [vmem:[#allocation2] sm:$0xff] (!%p1158_p8)  ;;  %v1901_v50 = vld [vmem:[#allocation2 + $0x8] sm:$0xff] (!%p1158_p8)  ;;  %v1906_v58 = vld [vmem:[#allocation2 + $0x10] sm:$0xff] (!%p1158_p8) }
 0x34d   : > { %1401 = vmatprep.subr.bf16.mxu0 (!%p1158_p8), %v1400_v39  ;;  %1464 = vmatprep.subr.bf16.mxu1 (!%p1158_p8), %v1400_v39  ;;  %v1908_v56 = vld [vmem:[#allocation2 + $0x18] sm:$0xff] (!%p1158_p8)  ;;  %v889_v60 = vld [vmem:[%s1770_s12 + $0x30] sm:$0xff] (!%p1158_p8)  ;;  %v891_v5 = vld [vmem:[%s1770_s12 + $0x40] sm:$0xff] (!%p1158_p8) }
 0x34e   : > { %778 = vmax.xlane.f32.xlu0 (!%p1158_p8), %v1807_v49  ;;  %780 = vmax.xlane.f32.xlu1 (!%p1158_p8), %v1803_v47  ;;  %v890_v57 = vld [vmem:[%s1770_s12 + $0x38] sm:$0xff] (!%p1158_p8)  ;;  %v892_v6 = vld [vmem:[%s1770_s12 + $0x48] sm:$0xff] (!%p1158_p8)  ;;  %v893_v8 = vld [vmem:[%s1770_s12 + $0x50] sm:$0xff] (!%p1158_p8) }
 0x34f   : > { %1403 = vmatpush3.bf16.msra.mxu0 (!%p1158_p8), %v1400_v39  ;;  %1472 = vmatpush3.bf16.msra.mxu1 (!%p1158_p8), %v1400_v39  ;;  %v1412_v63 = vpack.c.bf16 (!%p1158_p8), %v890_v57, %v889_v60  ;;  %v1416_v7 = vpack.c.bf16 (!%p1158_p8), %v892_v6, %v891_v5  ;;  %v894_v9 = vld [vmem:[%s1770_s12 + $0x58] sm:$0xff] (!%p1158_p8)  ;;  %v895_v11 = vld [vmem:[%s1770_s12 + $0x60] sm:$0xff] (!%p1158_p8)  ;;  %v896_v12 = vld [vmem:[%s1770_s12 + $0x68] sm:$0xff] (!%p1158_p8) }
 0x350   : > { %1405 = vmatprep.subr.bf16.mxu0 (!%p1158_p8), %v1404_v41  ;;  %1465 = vmatprep.subr.bf16.mxu1 (!%p1158_p8), %v1404_v41  ;;  %v1420_v10 = vpack.c.bf16 (!%p1158_p8), %v894_v9, %v893_v8  ;;  %v1424_v13 = vpack.c.bf16 (!%p1158_p8), %v896_v12, %v895_v11  ;;  %v897_v15 = vld [vmem:[%s1770_s12 + $0x70] sm:$0xff] (!%p1158_p8)  ;;  %v898_v16 = vld [vmem:[%s1770_s12 + $0x78] sm:$0xff] (!%p1158_p8)  ;;  %v830_v37 = vld [vmem:[#allocation3] sm:$0xff] (!%p1158_p8) }
 0x351   : > { %v1428_v17 = vpack.c.bf16 (!%p1158_p8), %v898_v16, %v897_v15  ;;  %v855_v57 = vld [vmem:[#allocation4] sm:$0xff] (!%p1158_p8) }
 0x353   : > { %1407 = vmatpush3.bf16.msra.mxu0 %v1404_v41  ;;  %1473 = vmatpush3.bf16.msra.mxu1 %v1404_v41  ;;  %v831_v41 = vld [vmem:[#allocation3 + $0x8] sm:$0xff] }
 0x354   : > { %1409 = vmatprep.subr.bf16.mxu0 %v1408_v44  ;;  %1466 = vmatprep.subr.bf16.mxu1 %v1408_v44 }
 0x357   : > { %1411 = vmatpush3.bf16.msra.mxu0 %v1408_v44  ;;  %1474 = vmatpush3.bf16.msra.mxu1 %v1408_v44 }
 0x358   : > { %1413 = vmatprep.subr.bf16.mxu0 %v1412_v63  ;;  %1467 = vmatprep.subr.bf16.mxu1 %v1412_v63 }
 0x35b   : > { %1415 = vmatpush3.bf16.msra.mxu0 %v1412_v63  ;;  %1475 = vmatpush3.bf16.msra.mxu1 %v1412_v63  ;;  %v858_v63 = vld [vmem:[#allocation4 + $0x18] sm:$0xff] }
 0x35c   : > { %1417 = vmatprep.subr.bf16.mxu0 %v1416_v7  ;;  %1468 = vmatprep.subr.bf16.mxu1 %v1416_v7 }
 0x35f   : > { %1419 = vmatpush3.bf16.msra.mxu0 %v1416_v7  ;;  %1476 = vmatpush3.bf16.msra.mxu1 %v1416_v7 }
 0x360   : > { %1421 = vmatprep.subr.bf16.mxu0 %v1420_v10  ;;  %1469 = vmatprep.subr.bf16.mxu1 %v1420_v10 }
 0x363   : > { %1423 = vmatpush3.bf16.msra.mxu0 %v1420_v10  ;;  %1477 = vmatpush3.bf16.msra.mxu1 %v1420_v10 }
 0x364   : > { %1425 = vmatprep.subr.bf16.mxu0 %v1424_v13  ;;  %1470 = vmatprep.subr.bf16.mxu1 %v1424_v13 }
 0x367   : > { %1427 = vmatpush3.bf16.msra.mxu0 %v1424_v13  ;;  %1478 = vmatpush3.bf16.msra.mxu1 %v1424_v13 }
 0x368   : > { %1429 = vmatprep.subr.bf16.mxu0 %v1428_v17  ;;  %1471 = vmatprep.subr.bf16.mxu1 %v1428_v17 }
 0x36b   : > { %1431 = vmatpush3.bf16.msra.mxu0 %v1428_v17  ;;  %1479 = vmatpush3.bf16.msra.mxu1 %v1428_v17 }
 0x3d7   : > { %v775_v51 = vpop.xlane.xlu0 %774  ;;  %v777_v52 = vpop.xlane.xlu1 %776 }
 0x3d8   : > { %v782_v53 = vmax.f32 %v770_v45, %v775_v51  ;;  %v1904_v54 = vmax.f32 %v1901_v50, %v777_v52 }
 0x3da   : > { %v786_v59 = vsub.f32 %v770_v45, %v782_v53  ;;  %992 = vst.msk [vmem:[#allocation2] sm:$0xff] %vm850_vm3, %v782_v53  ;;  %800 = vperm.xlu0 %1559, %v782_v53   ;;  %v787_v55 = vsub.f32 %v1901_v50, %v1904_v54  ;;  %993 = vst.msk [vmem:[#allocation2 + $0x8] sm:$0xff] %vm850_vm3, %v1904_v54  ;;  %v832_v50 = vld [vmem:[#allocation3 + $0x10] sm:$0xff]  ;;  %v833_v53 = vld [vmem:[#allocation3 + $0x18] sm:$0xff] }
 0x3db   : > { %v779_v61 = vpop.xlane.xlu0 %778  ;;  %v781_v62 = vpop.xlane.xlu1 %780 }
 0x3dc   : > { %v790_v0 = vmul.f32 1.442695, %v786_v59  ;;  %v1918_v1 = vmax.f32 %v1906_v58, %v779_v61  ;;  %v1921_v2 = vmax.f32 %v1908_v56, %v781_v62 }
 0x3de   : > { %1561 = vpow2.f32 %v790_v0  ;;  %v788_v3 = vsub.f32 %v1906_v58, %v1918_v1  ;;  %994 = vst.msk [vmem:[#allocation2 + $0x10] sm:$0xff] %vm850_vm3, %v1918_v1  ;;  %810 = vperm.xlu1 %1560, %v1918_v1   ;;  %v789_v4 = vsub.f32 %v1908_v56, %v1921_v2  ;;  %995 = vst.msk [vmem:[#allocation2 + $0x18] sm:$0xff] %vm850_vm3, %v1921_v2 }
 0x3e0   : > { %v796_v34 = vmul.f32 1.442695, %v789_v4 }
 0x3e2   : > { %805 = vperm.xlu1 %1560, %v1904_v54  }
 0x3e6   : > { %815 = vperm.xlu1 %1560, %v1921_v2   ;;  %v857_v2 = vld [vmem:[#allocation4 + $0x10] sm:$0xff] }
 0x3e8   : > { %v1562_v14 = vpop.eup %1561 }
 0x3e9   : > { %v834_v38 = vmul.f32 %v1562_v14, %v830_v37 }
 0x3ea   : > { %861 = vperm.xlu1 %1560, %v1562_v14  }
 0x459   : > { %v801_v18 = vpop.permute.xlu0 %800 }
 0x45a   : > { %v818_v19 = vsub.f32 %v1805_v48, %v801_v18  ;;  %v794_v48 = vmul.f32 1.442695, %v788_v3 }
 0x45c   : > { %v822_v20 = vmul.f32 1.442695, %v818_v19 }
 0x45d   : > { %v811_v21 = vpop.permute.xlu1 %810 }
 0x45e   : > { %1563 = vpow2.f32 %v822_v20  ;;  %v820_v22 = vsub.f32 %v1807_v49, %v811_v21 }
 0x460   : > { %v826_v23 = vmul.f32 1.442695, %v820_v22 }
 0x461   : > { %v806_v24 = vpop.permute.xlu1 %805 }
 0x462   : > { %1565 = vpow2.f32 %v826_v23  ;;  %v819_v25 = vsub.f32 %v1801_v46, %v806_v24  ;;  %v792_v46 = vmul.f32 1.442695, %v787_v55  ;;  %v856_v55 = vld [vmem:[#allocation4 + $0x8] sm:$0xff] }
 0x464   : > { %v824_v26 = vmul.f32 1.442695, %v819_v25 }
 0x465   : > { %v816_v27 = vpop.permute.xlu1 %815 }
 0x466   : > { %1567 = vpow2.f32 %v824_v26  ;;  %v821_v28 = vsub.f32 %v1803_v47, %v816_v27 }
 0x468   : > { %v1564_v29 = vpop.eup %1563  ;;  %v828_v30 = vmul.f32 1.442695, %v821_v28 }
 0x469   : > { %1330 = vmatprep.mubr.f32.mxu0 %v1564_v29  ;;  %838 = vadd.xlane.f32.xlu1 %v1564_v29  ;;  %v862_v36 = vpop.permute.xlu1 %861 }
 0x46a   : > { %1569 = vpow2.f32 %v828_v30  ;;  %v879_v62 = vmul.f32 %v862_v36, %v855_v57 }
 0x46b   : > { %1571 = vpow2.f32 %v794_v48 }
 0x46c   : > { %v1566_v31 = vpop.eup %1565  ;;  %1573 = vpow2.f32 %v792_v46 }
 0x46d   : > { %1333 = vmatprep.mubr.f32.mxu1 %v1566_v31  ;;  %1575 = vpow2.f32 %v796_v34 }
 0x470   : > { %v1568_v49 = vpop.eup %1567 }
 0x471   : > { %840 = vadd.xlane.f32.xlu0 %v1568_v49  ;;  %1331 = vmatmul.mubr.f32.vlgmr.msra.gmra.mrb[0].mxu0 %v1568_v49 }
 0x474   : > { %v1570_v32 = vpop.eup %1569 }
 0x475   : > { %1334 = vmatmul.mubr.f32.vlgmr.msra.gmra.mrb[0].mxu1 %v1570_v32  ;;  %v1572_v33 = vpop.eup %1571 }
 0x476   : > { %v1574_v47 = vpop.eup %1573  ;;  %v836_v51 = vmul.f32 %v1572_v33, %v832_v50 }
 0x477   : > { %v1576_v35 = vpop.eup %1575  ;;  %v835_v42 = vmul.f32 %v1574_v47, %v831_v41 }
 0x478   : > { %v837_v58 = vmul.f32 %v1576_v35, %v833_v53 }
 0x47a   : > { %871 = vperm.xlu1 %1560, %v1572_v33  }
 0x487   : > { %866 = vperm.xlu0 %1559, %v1574_v47  }
 0x49e   : > { %842 = vadd.xlane.f32.xlu1 %v1566_v31 }
 0x4a2   : > { %844 = vadd.xlane.f32.xlu1 %v1570_v32 }
 0x4b3   : > { %876 = vperm.xlu1 %1560, %v1576_v35  }
 0x4f6   : > { %v839_v39 = vpop.xlane.xlu1 %838 }
 0x4f7   : > { %v846_v40 = vadd.f32 %v839_v39, %v834_v38 }
 0x4f9   : > { %851 = vst.msk [vmem:[#allocation3] sm:$0xff] %vm850_vm3, %v846_v40 }
 0x4fa   : > { %v872_v45 = vpop.permute.xlu1 %871 }
 0x4fb   : > { %v881_v7 = vmul.f32 %v872_v45, %v857_v2 }
 0x4fe   : > { %v841_v43 = vpop.xlane.xlu0 %840 }
 0x4ff   : > { %v847_v44 = vadd.f32 %v841_v43, %v835_v42 }
 0x501   : > { %852 = vst.msk [vmem:[#allocation3 + $0x8] sm:$0xff] %vm850_vm3, %v847_v44 }
 0x506   : > { %v867_v60 = vpop.permute.xlu0 %866 }
 0x507   : > { %v880_v61 = vmul.f32 %v867_v60, %v856_v55 }
 0x52b   : > { %v843_v52 = vpop.xlane.xlu1 %842 }
 0x52c   : > { %v848_v54 = vadd.f32 %v843_v52, %v836_v51 }
 0x52e   : > { %853 = vst.msk [vmem:[#allocation3 + $0x10] sm:$0xff] %vm850_vm3, %v848_v54 }
 0x52f   : > { %v845_v56 = vpop.xlane.xlu1 %844 }
 0x530   : > { %v849_v59 = vadd.f32 %v845_v56, %v837_v58 }
 0x532   : > { %854 = vst.msk [vmem:[#allocation3 + $0x18] sm:$0xff] %vm850_vm3, %v849_v59 }
 0x533   : > { %v877_v0 = vpop.permute.xlu1 %876 }
 0x534   : > { %v882_v6 = vmul.f32 %v877_v0, %v858_v63 }
 0x544   : > { %v1332_v1 = vpop.f32.mrb[0].mxu0 }
 0x545   : > { %v985_v3 = vadd.f32 %v1332_v1, %v880_v61  ;;  %v965_v4 = vpop.f32.mrb[1].mxu0 }
 0x546   : > { %v984_v5 = vadd.f32 %v965_v4, %v879_v62 }
 0x547   : > { %989 = vst [vmem:[#allocation4 + $0x8] sm:$0xff] %v985_v3 }
 0x548   : > { %988 = vst [vmem:[#allocation4] sm:$0xff] %v984_v5  ;;  %v1335_v8 = vpop.f32.mrb[0].mxu1 }
 0x549   : > { %v987_v9 = vadd.f32 %v1335_v8, %v882_v6  ;;  %v975_v10 = vpop.f32.mrb[1].mxu1 }
 0x54a   : > { %v986_v11 = vadd.f32 %v975_v10, %v881_v7 }
 0x54b   : > { %991 = vst [vmem:[#allocation4 + $0x18] sm:$0xff] %v987_v9 }
 0x54c   : > { %990 = vst [vmem:[#allocation4 + $0x10] sm:$0xff] %v986_v11 }
 0x54d PF: > { %998 = sbr.rel (%p1156_p7) target bundleno = 1506 (0x5e2), region = 90  ;;  %v1005_v12 = vld [vmem:[#allocation3 + $0x10] sm:$0xff] (!%p1156_p7)  ;;  %v1003_v13 = vld [vmem:[#allocation3] sm:$0xff] (!%p1156_p7)  ;;  %v1647_v14 = vmov (!%p1156_p7), 0   ;;  %v1006_v15 = vld [vmem:[#allocation3 + $0x18] sm:$0xff] (!%p1156_p7) }
 0x54e   : > { %1578 = vset.pattern.permute.xlu1 (!%p1156_p7), %v1647_v14  ;;  %1577 = vset.pattern.permute.xlu0 (!%p1156_p7), %v1647_v14  ;;  %v1004_v16 = vld [vmem:[#allocation3 + $0x8] sm:$0xff] (!%p1156_p7) }
 0x54f   : > { %1019 = vperm.xlu1 (!%p1156_p7), %1578, %v1005_v12   ;;  %1009 = vperm.xlu0 (!%p1156_p7), %1577, %v1003_v13   ;;  %v999_v21 = vld [vmem:[#allocation4] sm:$0xff] (!%p1156_p7)  ;;  %v1000_v25 = vld [vmem:[#allocation4 + $0x8] sm:$0xff] (!%p1156_p7) }
 0x552   : > { %v1002_v29 = vld [vmem:[#allocation4 + $0x18] sm:$0xff] (!%p1156_p7) }
 0x553   : > { %1024 = vperm.xlu1 (!%p1156_p7), %1578, %v1006_v15   ;;  %1014 = vperm.xlu0 (!%p1156_p7), %1577, %v1004_v16   ;;  %v1001_v27 = vld [vmem:[#allocation4 + $0x10] sm:$0xff] (!%p1156_p7) }
 0x5ce   : > { %v1020_v17 = vpop.permute.xlu1 %1019  ;;  %v1010_v18 = vpop.permute.xlu0 %1009 }
 0x5cf   : > { %1579 = vrcp.f32 %v1010_v18 }
 0x5d0   : > { %1581 = vrcp.f32 %v1020_v17 }
 0x5d2   : > { %v1025_v19 = vpop.permute.xlu1 %1024  ;;  %v1015_v20 = vpop.permute.xlu0 %1014 }
 0x5d3   : > { %1583 = vrcp.f32 %v1025_v19 }
 0x5d4   : > { %1585 = vrcp.f32 %v1015_v20 }
 0x5d9   : > { %v1580_v22 = vpop.eup %1579 }
 0x5da   : > { %v1028_v23 = vmul.f32 %v1580_v22, %v999_v21  ;;  %v1582_v24 = vpop.eup %1581 }
 0x5db   : > { %v1032_v48 = vmul.f32 %v1582_v24, %v1001_v27 }
 0x5dc   : > { %1035 = vst [vmem:[%s1763_s7] sm:$0xff] %v1028_v23 }
 0x5dd   : > { %v1584_v26 = vpop.eup %1583  ;;  %1037 = vst [vmem:[%s1763_s7 + $0x10] sm:$0xff] %v1032_v48 }
 0x5de   : > { %v1586_v28 = vpop.eup %1585  ;;  %v1034_v31 = vmul.f32 %v1584_v26, %v1002_v29 }
 0x5df   : > { %v1030_v30 = vmul.f32 %v1586_v28, %v1000_v25 }
 0x5e0   : > { %1038 = vst [vmem:[%s1763_s7 + $0x18] sm:$0xff] %v1034_v31 }
 0x5e1   : > { %1036 = vst [vmem:[%s1763_s7 + $0x8] sm:$0xff] %v1030_v30 }
 0x5e2 PF: > { %s15_s23 = sadd.s32 1, %s1641_s23   ;;  %s1988_s17 = smov %s1621_s18 }
 0x5e3   : > { %p12_p9 = scmp.ge.s32.totalorder %s15_s23, 8   ;;  %s1989_s18 = smov %s1727_s30 }
 0x5e4   : > { %s1990_s19 = smov %s1633_s21  ;;  %s1991_s20 = smov %s1637_s22 }
 0x5e5   : > { %s1992_s21 = smov %s1995_s0  ;;  %s1993_s22 = smov %s1999_s24 }
 0x5e6   :  { %14 = sbr.rel (!%p12_p9) target bundleno = 6 (0x6), region = 131 }

// kernel: word2vec_forward.5
= control target key start
LH: loop header
LB: loop body
LE: loop exit
PB: predicated region body
PF: predicated region fallthrough
CT: control target
= control target key end

     0   :  { %s264_s0 = inlined_call_operand.vmem [shape: f32[16,128], index: 0, kind: input, shape index: {}]   ;;  %s265_s1 = inlined_call_operand.vmem [shape: f32[16,128], index: 1, kind: input, shape index: {}]   ;;  %s266_s2 = inlined_call_operand.vmem [shape: f32[16,640], index: 2, kind: input, shape index: {}]   ;;  %s267_s3 = inlined_call_operand.hbm [shape: f32[1,1], index: 3, kind: output, shape index: {}]  }
   0x1   :  { %v16_v0 = vld [vmem:[%s264_s0 + $0x8] sm:$0xff]  ;;  %v15_v2 = vld [vmem:[%s264_s0] sm:$0xff]  ;;  %v36_v5 = vld [vmem:[%s266_s2 + $0x30] sm:$0xff] }
   0x2   :  { %v26_v1 = vld [vmem:[%s266_s2 + $0x28] sm:$0xff]  ;;  %v25_v4 = vld [vmem:[%s266_s2] sm:$0xff]  ;;  %v38_v8 = vmul.f32 %v36_v5, %v16_v0  ;;  %v46_v10 = vld [vmem:[%s266_s2 + $0x38] sm:$0xff] }
   0x3   :  { %v28_v3 = vmul.f32 %v26_v1, %v16_v0  ;;  %v35_v6 = vld [vmem:[%s266_s2 + $0x8] sm:$0xff]  ;;  %v27_v7 = vmul.f32 %v25_v4, %v15_v2 }
   0x4   :  { %v37_v9 = vmul.f32 %v35_v6, %v15_v2 }
   0x5   :  { %31 = vadd.xlane.f32.xlu0 %v28_v3  ;;  %29 = vadd.xlane.f32.xlu1 %v27_v7 }
   0x6   :  { %8 = vsyncpa [#allocation3], 0  ;;  %v45_v11 = vld [vmem:[%s266_s2 + $0x10] sm:$0xff]  ;;  %v48_v12 = vmul.f32 %v46_v10, %v16_v0  ;;  %v56_v14 = vld [vmem:[%s266_s2 + $0x40] sm:$0xff]  ;;  %v117_v4 = vlaneseq  ;;  %vm132_vm1 = vcmask 0  }
   0x7   :  { %v47_v13 = vmul.f32 %v45_v11, %v15_v2  ;;  %v55_v15 = vld [vmem:[%s266_s2 + $0x18] sm:$0xff]  ;;  %v58_v16 = vmul.f32 %v56_v14, %v16_v0  ;;  %v66_v18 = vld [vmem:[%s266_s2 + $0x48] sm:$0xff]  ;;  %v65_v19 = vld [vmem:[%s266_s2 + $0x20] sm:$0xff] }
   0x8   :  { %v57_v17 = vmul.f32 %v55_v15, %v15_v2  ;;  %v68_v20 = vmul.f32 %v66_v18, %v16_v0  ;;  %v67_v21 = vmul.f32 %v65_v19, %v15_v2  ;;  %v18_v22 = vld [vmem:[%s265_s1 + $0x8] sm:$0xff]  ;;  %v17_v23 = vld [vmem:[%s265_s1] sm:$0xff]  ;;  %v118_v6 = vshrl.u32 %v117_v4, 7  ;;  %s189_s1 = smov [#allocation2]  }
   0x9   :  { %41 = vadd.xlane.f32.xlu0 %v38_v8  ;;  %39 = vadd.xlane.f32.xlu1 %v37_v9  ;;  %v20_v24 = vmul.f32 %v18_v22, %v16_v0  ;;  %v19_v25 = vmul.f32 %v17_v23, %v15_v2  ;;  %s140_s2 = sshll.u32 %s189_s1, 4  ;;  %s141_s2 = int_to_ptr.vmem [resolvable:$true] %s140_s2 }
   0xa   :  { %v119_v14 = vadd.s32 8, %v118_v6  ;;  %s165_s12 = scalar_lea.vmem %s141_s2, 16  ;;  %s169_s13 = scalar_lea.vmem %s141_s2, 32 }
   0xb   :  { %p166_p0 = scmp.ne.s32.totalorder %s141_s2, %s165_s12  ;;  %p170_p1 = scmp.lt.s32.totalorder %s141_s2, %s141_s2 }
   0xc   :  { %vm121_vm0 = vcmp.lt.s32.totalorder %v119_v14, 10  ;;  %p171_p2 = scmp.lt.s32.totalorder %s169_s13, %s165_s12 }
   0xd   :  { %51 = vadd.xlane.f32.xlu0 %v48_v12  ;;  %49 = vadd.xlane.f32.xlu1 %v47_v13 }
   0xe   :  { %p172_p3 = por %p171_p2, %p170_p1 }
  0x10   :  { %p173_p4 = pnand %p172_p3, %p166_p0 }
  0x11   :  { %61 = vadd.xlane.f32.xlu0 %v58_v16  ;;  %59 = vadd.xlane.f32.xlu1 %v57_v17 }
  0x15   :  { %71 = vadd.xlane.f32.xlu0 %v68_v20  ;;  %69 = vadd.xlane.f32.xlu1 %v67_v21 }
  0x19   :  { %23 = vadd.xlane.f32.xlu0 %v20_v24  ;;  %21 = vadd.xlane.f32.xlu1 %v19_v25 }
  0x92   :  { %v32_v26 = vpop.xlane.xlu0 %31  ;;  %v30_v27 = vpop.xlane.xlu1 %29 }
  0x96   :  { %v42_v28 = vpop.xlane.xlu0 %41  ;;  %v40_v29 = vpop.xlane.xlu1 %39 }
  0x97   :  { %v44_v32 = vadd.f32 %v42_v28, %v32_v26  ;;  %v43_v33 = vadd.f32 %v40_v29, %v30_v27 }
  0x9a   :  { %v52_v30 = vpop.xlane.xlu0 %51  ;;  %v50_v31 = vpop.xlane.xlu1 %49 }
  0x9b   :  { %v54_v35 = vadd.f32 %v52_v30, %v44_v32  ;;  %v53_v37 = vadd.f32 %v50_v31, %v43_v33 }
  0x9e   :  { %v62_v34 = vpop.xlane.xlu0 %61  ;;  %v60_v36 = vpop.xlane.xlu1 %59 }
  0x9f   :  { %v64_v38 = vadd.f32 %v62_v34, %v54_v35  ;;  %v63_v39 = vadd.f32 %v60_v36, %v53_v37 }
  0xa2   :  { %v72_v40 = vpop.xlane.xlu0 %71  ;;  %v70_v42 = vpop.xlane.xlu1 %69 }
  0xa3   :  { %v74_v41 = vadd.f32 %v72_v40, %v64_v38  ;;  %v73_v43 = vadd.f32 %v70_v42, %v63_v39 }
  0xa5   :  { %v96_v44 = vsub.f32 0.0, %v74_v41  ;;  %v95_v45 = vsub.f32 0.0, %v73_v43 }
  0xa6   :  { %v24_v46 = vpop.xlane.xlu0 %23  ;;  %v22_v49 = vpop.xlane.xlu1 %21 }
  0xa7   :  { %v100_v47 = vand.u32 2147483647, %v96_v44  ;;  %v78_v48 = vand.u32 2147483647, %v24_v46  ;;  %v99_v50 = vand.u32 2147483647, %v95_v45 }
  0xa8   :  { %v77_v51 = vand.u32 2147483647, %v22_v49  ;;  %v76_v11 = vmin.f32 %v24_v46, 0.0  ;;  %v75_v15 = vmin.f32 %v22_v49, 0.0  ;;  %v98_v17 = vmin.f32 %v96_v44, 0.0 }
  0xa9   :  { %v102_v52 = vsub.f32 0.0, %v100_v47  ;;  %v80_v53 = vsub.f32 0.0, %v78_v48  ;;  %v101_v54 = vsub.f32 0.0, %v99_v50  ;;  %v97_v19 = vmin.f32 %v95_v45, 0.0 }
  0xaa   :  { %v79_v55 = vsub.f32 0.0, %v77_v51 }
  0xab   :  { %v105_v56 = vmul.f32 1.442695, %v102_v52  ;;  %v83_v57 = vmul.f32 1.442695, %v80_v53  ;;  %v103_v58 = vmul.f32 1.442695, %v101_v54 }
  0xac   :  { %v81_v59 = vmul.f32 1.442695, %v79_v55 }
  0xad   :  { %149 = vpow2.f32 %v105_v56 }
  0xae   :  { %151 = vpow2.f32 %v103_v58 }
  0xaf   :  { %153 = vpow2.f32 %v83_v57 }
  0xb0   :  { %155 = vpow2.f32 %v81_v59 }
  0xb7   :  { %v150_v60 = vpop.eup %149 }
  0xb8   :  { %v152_v61 = vpop.eup %151  ;;  %v108_v62 = vadd.f32 1.0, %v150_v60 }
  0xb9   :  { %v154_v63 = vpop.eup %153  ;;  %v107_v0 = vadd.f32 1.0, %v152_v61 }
  0xba   :  { %v156_v1 = vpop.eup %155  ;;  %157 = vlog2.f32 %v108_v62  ;;  %v86_v2 = vadd.f32 1.0, %v154_v63 }
  0xbb   :  { %159 = vlog2.f32 %v107_v0  ;;  %v85_v3 = vadd.f32 1.0, %v156_v1 }
  0xbc   :  { %161 = vlog2.f32 %v86_v2 }
  0xbd   :  { %163 = vlog2.f32 %v85_v3 }
  0xc4   :  { %v158_v5 = vpop.eup %157 }
  0xc5   :  { %v160_v7 = vpop.eup %159  ;;  %v112_v10 = vmul.f32 0.6931472, %v158_v5 }
  0xc6   :  { %v162_v8 = vpop.eup %161  ;;  %v110_v13 = vmul.f32 0.6931472, %v160_v7 }
  0xc7   :  { %v164_v9 = vpop.eup %163  ;;  %v90_v12 = vmul.f32 0.6931472, %v162_v8  ;;  %v114_v21 = vsub.f32 %v98_v17, %v112_v10 }
  0xc8   :  { %v88_v16 = vmul.f32 0.6931472, %v164_v9  ;;  %v113_v23 = vsub.f32 %v97_v19, %v110_v13 }
  0xc9   :  { %v92_v18 = vsub.f32 %v76_v11, %v90_v12 }
  0xca   :  { %v91_v20 = vsub.f32 %v75_v15, %v88_v16 }
  0xcb   :  { %v94_v22 = vsub.f32 0.0, %v92_v18 }
  0xcc   :  { %v93_v24 = vsub.f32 0.0, %v91_v20 }
  0xcd   :  { %v116_v25 = vsub.f32 %v94_v22, %v114_v21 }
  0xce   :  { %v115_v26 = vsub.f32 %v93_v24, %v113_v23 }
  0xcf   :  { %v123_v27 = vsel %vm121_vm0, %v116_v25, 0.0 }
  0xd0   :  { %v124_v28 = vadd.f32 %v123_v27, %v115_v26 }
  0xd2   :  { %v125_v29 = vrot.slane %v124_v28, 4 }
  0xd4   :  { %v126_v30 = vadd.f32 %v125_v29, %v124_v28 }
  0xd6   :  { %v127_v31 = vrot.slane %v126_v30, 2 }
  0xd8   :  { %v128_v32 = vadd.f32 %v127_v31, %v126_v30 }
  0xda   :  { %v129_v33 = vrot.slane %v128_v32, 1 }
  0xdc   :  { %v130_v34 = vadd.f32 %v129_v33, %v128_v32 }
  0xde   :  { %v131_v35 = vmul.f32 0.1, %v130_v34 }
  0xe0   :  { %133 = vst.msk [vmem:[#allocation2] sm:$0x1] %vm132_vm1, %v131_v35 }
  0xe1   :  { %176 = shalt.err (!%p173_p4)
}
  0xe2   :  { %s177_s16 = scalar_lea.hbm %s267_s3, 16 }
  0xe3   :  { %p178_p5 = scmp.ne.s32.totalorder %s267_s3, %s177_s16  ;;  %p181_p6 = scmp.lt.u32.totalorder %s177_s16, %s267_s3 }
  0xe5   :  { %p183_p7 = pnand %p181_p6, %p178_p5 }
  0xe7   :  { %186 = shalt.err (!%p183_p7)
}
  0xe8   :  { %143 = dma.vmem_to_hbm [thread:$0]  %s141_s2, 16, %s267_s3, [#allocation3]  }
  0xe9   :  { %187 = dma.done.wait [#allocation3], 16  }
  0xea   :  { %188 = vsyncadd [#allocation3], 4294967280 }
  0xeb   :  { %147 = vsyncpa [#allocation3], 1 }

</bundles_post_ra>
